<compile_context>
chip_gen: v7x
topology: tpu7x:2x2x1
jax: 0.10.0
libtpu: 0.0.40
codegen_flags: <defaults>
</compile_context>

<pallas_src>
import jax
import jax.numpy as jnp
from jax import lax
from jax.experimental import pallas as pl
from jax.experimental.pallas import tpu as pltpu


# ----------------------------- Pallas kernel ------------------------------

def c1_fused_kernel(p_ref, w1_ref, b1_ref, w2t_ref, b2_ref, k_ref, o_ref):
    """Fused conv3x3+BN+ReLU -> 1x1 conv -> bilinear upsample.

    p_ref:   (B*H*W, 9*Cin)     im2col patches of the NHWC input
    w1_ref:  (9*Cin, Cmid)      3x3 conv weight with BN scale folded in
    b1_ref:  (1, Cmid)          folded BN bias
    w2t_ref: (C, Cmid)          1x1 conv weight, transposed
    b2_ref:  (C, 1)             1x1 conv bias
    k_ref:   (H*W, Hout*Wout)   Kronecker bilinear-resize matrix
    o_ref:   (B, C, Hout*Wout)
    """
    B, C, OHW = o_ref.shape
    HW = k_ref.shape[0]

    # conv3x3 (as im2col) + BN + ReLU: one K=9*Cin MXU matmul + VPU epilogue.
    h = lax.dot_general(
        p_ref[...], w1_ref[...],
        dimension_numbers=(((1,), (0,)), ((), ())),
        preferred_element_type=jnp.float32)                        # (B*HW, Cmid)
    h = jnp.maximum(h + b1_ref[...], 0.0)

    kmat = k_ref[...]
    w2t = w2t_ref[...]
    b2 = b2_ref[...]
    for b in range(B):                                             # B static & tiny
        hb = h[b * HW:(b + 1) * HW, :]                             # (HW, Cmid)
        # 1x1 conv, produced channel-major directly via A @ B^T (no transpose).
        zt = lax.dot_general(
            w2t, hb,
            dimension_numbers=(((1,), (1,)), ((), ())),
            preferred_element_type=jnp.float32)                    # (C, HW)
        # bilinear upsample: K=HW contraction, lane-dense (C, Hout*Wout) output.
        ob = lax.dot_general(
            zt, kmat,
            dimension_numbers=(((1,), (0,)), ((), ())),
            preferred_element_type=jnp.float32)                    # (C, OHW)
        o_ref[b] = (ob + b2).astype(o_ref.dtype)


# ------------------------------- glue / setup ------------------------------

def _full_spec(shape):
    nd = len(shape)
    return pl.BlockSpec(shape, lambda i, _nd=nd: (0,) * _nd)


def resize_matrix(n_in, n_out):
    """Bilinear interpolation matrix, PyTorch align_corners=False semantics."""
    scale = n_in / n_out
    dst = jnp.arange(n_out, dtype=jnp.float32)
    src = jnp.clip((dst + 0.5) * scale - 0.5, 0.0, n_in - 1)
    i0 = jnp.floor(src).astype(jnp.int32)
    i1 = jnp.minimum(i0 + 1, n_in - 1)
    frac = src - i0.astype(jnp.float32)
    rows = jnp.arange(n_out)
    m = jnp.zeros((n_out, n_in), jnp.float32)
    m = m.at[rows, i0].add(1.0 - frac)
    m = m.at[rows, i1].add(frac)
    return m


def init_params(key, in_channels, mid_channels, num_classes):
    k1, k2, k3, k4, k5, k6, k7 = jax.random.split(key, 7)
    # 3x3 conv, kaiming_normal fan_out: std = sqrt(2 / (Cout * 3 * 3))
    std1 = (2.0 / (mid_channels * 9)) ** 0.5
    w1 = jax.random.normal(k1, (3, 3, in_channels, mid_channels), jnp.float32) * std1
    # BatchNorm2d (eval-mode running stats; deterministic non-trivial values)
    gamma = 1.0 + 0.1 * jax.random.normal(k2, (mid_channels,), jnp.float32)
    beta = 0.05 * jax.random.normal(k3, (mid_channels,), jnp.float32)
    mean = 0.1 * jax.random.normal(k4, (mid_channels,), jnp.float32)
    var = jnp.abs(jax.random.normal(k5, (mid_channels,), jnp.float32)) + 1.0
    # final 1x1 conv
    std2 = (1.0 / mid_channels) ** 0.5
    w2 = jax.random.normal(k6, (mid_channels, num_classes), jnp.float32) * std2
    b2 = 0.01 * jax.random.normal(k7, (num_classes,), jnp.float32)
    return dict(w1=w1, gamma=gamma, beta=beta, mean=mean, var=var, w2=w2, b2=b2)


def c1_forward(x_nchw, params, out_size):
    """Pallas implementation of c1.forward. x_nchw: (B, Cin, H, W) float32."""
    x = jnp.transpose(x_nchw, (0, 2, 3, 1)).astype(jnp.float32)    # NHWC
    B, H, W, Cin = x.shape
    Cmid = params['w1'].shape[-1]
    C = params['w2'].shape[-1]
    Hout, Wout = out_size
    HW, OHW = H * W, Hout * Wout

    # im2col patches (pad + 9 shifted slices fuse into one small XLA prep op);
    # the kernel itself never writes/reads any intermediate to HBM.
    xp = jnp.pad(x, ((0, 0), (1, 1), (1, 1), (0, 0)))
    patches = jnp.concatenate(
        [xp[:, ky:ky + H, kx:kx + W, :] for ky in range(3) for kx in range(3)],
        axis=-1).reshape(B * HW, 9 * Cin)

    # Fold eval-mode BatchNorm into the conv weight / bias.
    scale = params['gamma'] / jnp.sqrt(params['var'] + 1e-5)
    bias1 = (params['beta'] - params['mean'] * scale).reshape(1, Cmid)
    w1f = (params['w1'] * scale).reshape(9 * Cin, Cmid)            # (9*Cin, Cmid)
    w2t = params['w2'].T                                           # (C, Cmid)
    b2c = params['b2'].reshape(C, 1)

    # Kronecker bilinear matrix: kmat[h*W+w, oh*Wout+ow] = ry[oh,h]*rx[ow,w].
    ry = resize_matrix(H, Hout)                                    # (Hout, H)
    rx = resize_matrix(W, Wout)                                    # (Wout, W)
    kmat = jnp.einsum('oh,pw->hwop', ry, rx).reshape(HW, OHW)

    flops = 2 * (B * HW * (9 * Cin) * Cmid + B * C * HW * Cmid + B * C * HW * OHW)
    bytes_accessed = 4 * (patches.size + w1f.size + bias1.size + w2t.size
                          + b2c.size + kmat.size + B * C * OHW)

    out = pl.pallas_call(
        c1_fused_kernel,
        grid=(1,),
        in_specs=[_full_spec(patches.shape), _full_spec(w1f.shape),
                  _full_spec(bias1.shape), _full_spec(w2t.shape),
                  _full_spec(b2c.shape), _full_spec(kmat.shape)],
        out_specs=_full_spec((B, C, OHW)),
        out_shape=jax.ShapeDtypeStruct((B, C, OHW), jnp.float32),
        compiler_params=pltpu.CompilerParams(dimension_semantics=("arbitrary",)),
        cost_estimate=pl.CostEstimate(flops=flops, transcendentals=0,
                                      bytes_accessed=bytes_accessed),
    )(patches, w1f, bias1, w2t, b2c, kmat)

    return out.reshape(B, C, Hout, Wout)                           # NCHW, like PyTorch


def c1_reference(x_nchw, params, out_size):
    """Pure-JAX reference (module semantics) for validation."""
    x = jnp.transpose(x_nchw, (0, 2, 3, 1)).astype(jnp.float32)
    y = lax.conv_general_dilated(
        x, params['w1'], (1, 1), 'SAME',
        dimension_numbers=('NHWC', 'HWIO', 'NHWC'))
    scale = params['gamma'] / jnp.sqrt(params['var'] + 1e-5)
    bias = params['beta'] - params['mean'] * scale
    y = jnp.maximum(y * scale + bias, 0.0)
    z = jnp.einsum('bhwc,cd->bhwd', y, params['w2']) + params['b2']
    H, W = x.shape[1:3]
    Hout, Wout = out_size
    ry = resize_matrix(H, Hout)
    rx = resize_matrix(W, Wout)
    z = jnp.transpose(z, (0, 3, 1, 2))                             # NCHW
    return jnp.einsum('oh,bchw,pw->bcop', ry, z, rx)


# ---------------------------------- main -----------------------------------

if __name__ == "__main__":
    # Small shapes consistent with the module: feature map B*C*H*W, upsampled
    # to cfg.input_dim[-2:].
    B, Cin, H, W = 2, 4, 16, 16
    Cmid = 32                      # intermediate_channels_
    num_classes = 5
    img_size = (32, 32)            # cfg.input_dim[-2:]

    key = jax.random.PRNGKey(0)
    kx, kp = jax.random.split(key)
    x = jax.random.normal(kx, (B, Cin, H, W), jnp.float32)
    params = init_params(kp, Cin, Cmid, num_classes)

    out = jax.jit(lambda a: c1_forward(a, params, img_size))(x)
    out = jax.block_until_ready(out)

    ref = c1_reference(x, params, img_size)
    assert out.shape == (B, num_classes) + img_size, out.shape
    assert jnp.allclose(out, ref, rtol=2e-3, atol=2e-3), float(jnp.max(jnp.abs(out - ref)))

    print("KERNEL_OK")
</pallas_src>

<mosaic_0001>
module attributes {stable_mosaic.version = 11 : i64} {
  func.func private @main(%arg0: i32) attributes {dimension_semantics = [#tpu.dimension_semantics<core_parallel>], iteration_bounds = array<i64: 2>, tpu.core_type = #tpu.core_type<sc_scalar_subcore>, window_params = []} {
    return
  }
}

module attributes {stable_mosaic.version = 11 : i64} {
  func.func private @main(%arg0: i32) attributes {dimension_semantics = [#tpu.dimension_semantics<core_parallel>], iteration_bounds = array<i64: 2>, tpu.core_type = #tpu.core_type<sc_scalar_subcore>, window_params = []} {
    return
  }
}

module attributes {stable_mosaic.version = 11 : i64} {
  func.func @c1_fused_kernel(%arg0: i32, %arg1: memref<512x36xf32, #tpu.memory_space<vmem>>, %arg2: memref<36x32xf32, #tpu.memory_space<vmem>>, %arg3: memref<1x32xf32, #tpu.memory_space<vmem>>, %arg4: memref<5x32xf32, #tpu.memory_space<vmem>>, %arg5: memref<5x1xf32, #tpu.memory_space<vmem>>, %arg6: memref<256x1024xf32, #tpu.memory_space<vmem>>, %arg7: memref<2x5x1024xf32, #tpu.memory_space<vmem>>) attributes {dimension_semantics = [#tpu.dimension_semantics<arbitrary>], iteration_bounds = array<i64: 1>, scalar_prefetch = 0 : i64, scratch_operands = 0 : i64, tpu.core_type = #tpu.core_type<tc>, window_params = [{pipeline_mode = #tpu.pipeline_mode<synchronous>, transform_indices = @transform_0, window_bounds = array<i64: 512, 36>}, {pipeline_mode = #tpu.pipeline_mode<synchronous>, transform_indices = @transform_1, window_bounds = array<i64: 36, 32>}, {pipeline_mode = #tpu.pipeline_mode<synchronous>, transform_indices = @transform_2, window_bounds = array<i64: 1, 32>}, {pipeline_mode = #tpu.pipeline_mode<synchronous>, transform_indices = @transform_3, window_bounds = array<i64: 5, 32>}, {pipeline_mode = #tpu.pipeline_mode<synchronous>, transform_indices = @transform_4, window_bounds = array<i64: 5, 1>}, {pipeline_mode = #tpu.pipeline_mode<synchronous>, transform_indices = @transform_5, window_bounds = array<i64: 256, 1024>}, {pipeline_mode = #tpu.pipeline_mode<synchronous>, transform_indices = @transform_6, window_bounds = array<i64: 2, 5, 1024>}]} {
    %c0 = arith.constant 0 : index
    %c0_0 = arith.constant 0 : index
    %0 = vector.load %arg1[%c0, %c0_0] : memref<512x36xf32, #tpu.memory_space<vmem>>, vector<512x36xf32>
    %c0_1 = arith.constant 0 : index
    %c0_2 = arith.constant 0 : index
    %1 = vector.load %arg2[%c0_1, %c0_2] : memref<36x32xf32, #tpu.memory_space<vmem>>, vector<36x32xf32>
    %cst = arith.constant dense<0.000000e+00> : vector<512x32xf32>
    %2 = tpu.matmul %0, %1, %cst {dimension_numbers = #tpu.dot_dimension_numbers<[1], [0], [0], [1], [0, 0, 1, 1], [], []>} : vector<512x36xf32>, vector<36x32xf32>, vector<512x32xf32> -> vector<512x32xf32>
    %c0_3 = arith.constant 0 : index
    %c0_4 = arith.constant 0 : index
    %3 = vector.load %arg3[%c0_3, %c0_4] : memref<1x32xf32, #tpu.memory_space<vmem>>, vector<1x32xf32>
    %4 = vector.broadcast %3 : vector<1x32xf32> to vector<512x32xf32>
    %5 = arith.addf %2, %4 : vector<512x32xf32>
    %cst_5 = arith.constant 0.000000e+00 : f32
    %6 = vector.broadcast %cst_5 : f32 to vector<512x32xf32>
    %7 = arith.maximumf %5, %6 : vector<512x32xf32>
    %c0_6 = arith.constant 0 : index
    %c0_7 = arith.constant 0 : index
    %8 = vector.load %arg6[%c0_6, %c0_7] : memref<256x1024xf32, #tpu.memory_space<vmem>>, vector<256x1024xf32>
    %c0_8 = arith.constant 0 : index
    %c0_9 = arith.constant 0 : index
    %9 = vector.load %arg4[%c0_8, %c0_9] : memref<5x32xf32, #tpu.memory_space<vmem>>, vector<5x32xf32>
    %c0_10 = arith.constant 0 : index
    %c0_11 = arith.constant 0 : index
    %10 = vector.load %arg5[%c0_10, %c0_11] : memref<5x1xf32, #tpu.memory_space<vmem>>, vector<5x1xf32>
    %11 = vector.extract_strided_slice %7 {offsets = [0, 0], sizes = [256, 32], strides = [1, 1]} : vector<512x32xf32> to vector<256x32xf32>
    %cst_12 = arith.constant dense<0.000000e+00> : vector<5x256xf32>
    %12 = tpu.matmul %9, %11, %cst_12 {dimension_numbers = #tpu.dot_dimension_numbers<[1], [1], [0], [0], [0, 0, 1, 0], [], []>} : vector<5x32xf32>, vector<256x32xf32>, vector<5x256xf32> -> vector<5x256xf32>
    %cst_13 = arith.constant dense<0.000000e+00> : vector<5x1024xf32>
    %13 = tpu.matmul %12, %8, %cst_13 {dimension_numbers = #tpu.dot_dimension_numbers<[1], [0], [0], [1], [0, 0, 1, 1], [], []>} : vector<5x256xf32>, vector<256x1024xf32>, vector<5x1024xf32> -> vector<5x1024xf32>
    %14 = vector.broadcast %10 : vector<5x1xf32> to vector<5x1024xf32>
    %15 = arith.addf %13, %14 : vector<5x1024xf32>
    %c0_14 = arith.constant 0 : index
    %c0_15 = arith.constant 0 : index
    %c0_16 = arith.constant 0 : index
    %16 = vector.load %arg7[%c0_14, %c0_15, %c0_16] : memref<2x5x1024xf32, #tpu.memory_space<vmem>>, vector<1x5x1024xf32>
    %17 = vector.shape_cast %16 : vector<1x5x1024xf32> to vector<5x1024xf32>
    %18 = vector.shape_cast %15 : vector<5x1024xf32> to vector<1x5x1024xf32>
    tpu.vector_store %arg7[%c0_14, %c0_15, %c0_16], %18 {strides = array<i32>} : memref<2x5x1024xf32, #tpu.memory_space<vmem>>, vector<1x5x1024xf32>,
    %19 = vector.extract_strided_slice %7 {offsets = [256, 0], sizes = [256, 32], strides = [1, 1]} : vector<512x32xf32> to vector<256x32xf32>
    %cst_17 = arith.constant dense<0.000000e+00> : vector<5x256xf32>
    %20 = tpu.matmul %9, %19, %cst_17 {dimension_numbers = #tpu.dot_dimension_numbers<[1], [1], [0], [0], [0, 0, 1, 0], [], []>} : vector<5x32xf32>, vector<256x32xf32>, vector<5x256xf32> -> vector<5x256xf32>
    %cst_18 = arith.constant dense<0.000000e+00> : vector<5x1024xf32>
    %21 = tpu.matmul %20, %8, %cst_18 {dimension_numbers = #tpu.dot_dimension_numbers<[1], [0], [0], [1], [0, 0, 1, 1], [], []>} : vector<5x256xf32>, vector<256x1024xf32>, vector<5x1024xf32> -> vector<5x1024xf32>
    %22 = vector.broadcast %10 : vector<5x1xf32> to vector<5x1024xf32>
    %23 = arith.addf %21, %22 : vector<5x1024xf32>
    %c1 = arith.constant 1 : index
    %c0_19 = arith.constant 0 : index
    %c0_20 = arith.constant 0 : index
    %24 = vector.load %arg7[%c1, %c0_19, %c0_20] : memref<2x5x1024xf32, #tpu.memory_space<vmem>>, vector<1x5x1024xf32>
    %25 = vector.shape_cast %24 : vector<1x5x1024xf32> to vector<5x1024xf32>
    %26 = vector.shape_cast %23 : vector<5x1024xf32> to vector<1x5x1024xf32>
    tpu.vector_store %arg7[%c1, %c0_19, %c0_20], %26 {strides = array<i32>} : memref<2x5x1024xf32, #tpu.memory_space<vmem>>, vector<1x5x1024xf32>,
    return
  }
  func.func @transform_0(%arg0: i32) -> (i32, i32) {
    %c0_i32 = arith.constant 0 : i32
    %c0_i32_0 = arith.constant 0 : i32
    %c0_i32_1 = arith.constant 0 : i32
    return %c0_i32, %c0_i32_0 : i32, i32
  }
  func.func @transform_1(%arg0: i32) -> (i32, i32) {
    %c0_i32 = arith.constant 0 : i32
    %c0_i32_0 = arith.constant 0 : i32
    %c0_i32_1 = arith.constant 0 : i32
    return %c0_i32, %c0_i32_0 : i32, i32
  }
  func.func @transform_2(%arg0: i32) -> (i32, i32) {
    %c0_i32 = arith.constant 0 : i32
    %c0_i32_0 = arith.constant 0 : i32
    %c0_i32_1 = arith.constant 0 : i32
    return %c0_i32, %c0_i32_0 : i32, i32
  }
  func.func @transform_3(%arg0: i32) -> (i32, i32) {
    %c0_i32 = arith.constant 0 : i32
    %c0_i32_0 = arith.constant 0 : i32
    %c0_i32_1 = arith.constant 0 : i32
    return %c0_i32, %c0_i32_0 : i32, i32
  }
  func.func @transform_4(%arg0: i32) -> (i32, i32) {
    %c0_i32 = arith.constant 0 : i32
    %c0_i32_0 = arith.constant 0 : i32
    %c0_i32_1 = arith.constant 0 : i32
    return %c0_i32, %c0_i32_0 : i32, i32
  }
  func.func @transform_5(%arg0: i32) -> (i32, i32) {
    %c0_i32 = arith.constant 0 : i32
    %c0_i32_0 = arith.constant 0 : i32
    %c0_i32_1 = arith.constant 0 : i32
    return %c0_i32, %c0_i32_0 : i32, i32
  }
  func.func @transform_6(%arg0: i32) -> (i32, i32, i32) {
    %c0_i32 = arith.constant 0 : i32
    %c0_i32_0 = arith.constant 0 : i32
    %c0_i32_1 = arith.constant 0 : i32
    %c0_i32_2 = arith.constant 0 : i32
    return %c0_i32, %c0_i32_0, %c0_i32_1 : i32, i32, i32
  }
}

</mosaic_0001>

<bundles_post_ra>
// kernel: _lambda_.1
= control target key start
LH: loop header
LB: loop body
LE: loop exit
PB: predicated region body
PF: predicated region fallthrough
CT: control target
= control target key end

     0   :  { %vm99_vm0 = vcmask 293888   ;;  %vm292_vm1 = vcmask 1043456   ;;  %vm1003_vm2 = vcmask 261120   ;;  %s4831_s1 = inlined_call_operand.vmem [shape: f32[36,32], index: 1, kind: input, shape index: {}]   ;;  %s4832_s0 = inlined_call_operand.vmem [shape: f32[512,36], index: 0, kind: input, shape index: {}]   ;;  %s4833_s3 = inlined_call_operand.vmem [shape: f32[5,32], index: 3, kind: input, shape index: {}]   ;;  %s4834_s5 = inlined_call_operand.vmem [shape: f32[256,1024], index: 5, kind: input, shape index: {}]   ;;  %s4835_s2 = inlined_call_operand.vmem [shape: f32[1,32], index: 2, kind: input, shape index: {}]   ;;  %s4836_s4 = inlined_call_operand.vmem [shape: f32[5,1], index: 4, kind: input, shape index: {}]   ;;  %s4837_s6 = inlined_call_operand.vmem [shape: f32[2,5,1024], index: 6, kind: output, shape index: {}]  }
   0x1   :  { %v87_v0 = vld [vmem:[%s4831_s1] sm:$0xff]  ;;  %v88_v1 = vld [vmem:[%s4831_s1 + $0x8] sm:$0xff]  ;;  %v89_v2 = vld [vmem:[%s4831_s1 + $0x10] sm:$0xff] }
   0x2   :  { %v2318_v3 = vpack.c.bf16 %v88_v1, %v87_v0  ;;  %v90_v4 = vld [vmem:[%s4831_s1 + $0x18] sm:$0xff]  ;;  %v23_v5 = vld [vmem:[%s4832_s0] sm:$0xff]  ;;  %v24_v8 = vld [vmem:[%s4832_s0 + $0x8] sm:$0xff] }
   0x3   :  { %v2322_v6 = vpack.c.bf16 %v90_v4, %v89_v2  ;;  %2222 = vmatprep.mubr.msk.f32.mxu0 %vm99_vm0, %v23_v5  ;;  %v91_v7 = vld [vmem:[%s4831_s1 + $0x20] sm:$0xf]  ;;  %v25_v9 = vld [vmem:[%s4832_s0 + $0x10] sm:$0xff]  ;;  %v26_v10 = vld [vmem:[%s4832_s0 + $0x18] sm:$0xff] }
   0x4   :  { %2319 = vmatprep.subr.bf16.mxu0 %v2318_v3  ;;  %v27_v11 = vld [vmem:[%s4832_s0 + $0x20] sm:$0xff]  ;;  %v28_v12 = vld [vmem:[%s4832_s0 + $0x28] sm:$0xff]  ;;  %v29_v13 = vld [vmem:[%s4832_s0 + $0x30] sm:$0xff] }
   0x5   :  { %2321 = vmatpush3.bf16.msra.mxu0 %v2318_v3  ;;  %v30_v14 = vld [vmem:[%s4832_s0 + $0x38] sm:$0xff]  ;;  %v31_v15 = vld [vmem:[%s4832_s0 + $0x40] sm:$0xff]  ;;  %v32_v16 = vld [vmem:[%s4832_s0 + $0x48] sm:$0xff] }
   0x6   :  { %2323 = vmatprep.subr.bf16.mxu0 %v2322_v6  ;;  %v33_v17 = vld [vmem:[%s4832_s0 + $0x50] sm:$0xff]  ;;  %v34_v18 = vld [vmem:[%s4832_s0 + $0x58] sm:$0xff]  ;;  %v35_v19 = vld [vmem:[%s4832_s0 + $0x60] sm:$0xff] }
   0x7   :  { %v36_v20 = vld [vmem:[%s4832_s0 + $0x68] sm:$0xff]  ;;  %v37_v21 = vld [vmem:[%s4832_s0 + $0x70] sm:$0xff]  ;;  %v38_v22 = vld [vmem:[%s4832_s0 + $0x78] sm:$0xff] }
   0x8   :  { %v39_v23 = vld [vmem:[%s4832_s0 + $0x80] sm:$0xff]  ;;  %v40_v24 = vld [vmem:[%s4832_s0 + $0x88] sm:$0xff]  ;;  %v41_v25 = vld [vmem:[%s4832_s0 + $0x90] sm:$0xff] }
   0x9   :  { %2325 = vmatpush3.bf16.msra.mxu0 %v2322_v6  ;;  %v42_v26 = vld [vmem:[%s4832_s0 + $0x98] sm:$0xff]  ;;  %v43_v27 = vld [vmem:[%s4832_s0 + $0xa0] sm:$0xff]  ;;  %v44_v28 = vld [vmem:[%s4832_s0 + $0xa8] sm:$0xff] }
   0xa   :  { %2220 = vmatprep.subr.msk.mxu0 %vm292_vm1, %v91_v7  ;;  %v45_v29 = vld [vmem:[%s4832_s0 + $0xb0] sm:$0xff]  ;;  %v46_v30 = vld [vmem:[%s4832_s0 + $0xb8] sm:$0xff]  ;;  %v47_v31 = vld [vmem:[%s4832_s0 + $0xc0] sm:$0xff] }
   0xb   :  { %v48_v32 = vld [vmem:[%s4832_s0 + $0xc8] sm:$0xff]  ;;  %v49_v33 = vld [vmem:[%s4832_s0 + $0xd0] sm:$0xff]  ;;  %v50_v34 = vld [vmem:[%s4832_s0 + $0xd8] sm:$0xff] }
   0xc   :  { %v51_v35 = vld [vmem:[%s4832_s0 + $0xe0] sm:$0xff]  ;;  %v52_v36 = vld [vmem:[%s4832_s0 + $0xe8] sm:$0xff]  ;;  %v53_v37 = vld [vmem:[%s4832_s0 + $0xf0] sm:$0xff] }
   0xd   :  { %2221 = vmatpush3.msk.msra.mxu0 %vm292_vm1, %v91_v7  ;;  %v54_v38 = vld [vmem:[%s4832_s0 + $0xf8] sm:$0xff]  ;;  %v3120_v39 = vld [vmem:[%s4833_s3] sm:$0x1f]  ;;  %v56_v41 = vld [vmem:[%s4832_s0 + $0x108] sm:$0xff] }
   0xe   :  { %2223 = vmatmul.mubr.msk.f32.vlgmr.msra.gmra.mrb[0].mxu0 %vm99_vm0, %v24_v8  ;;  %2176 = vmatprep.mubr.msk.f32.mxu1 %vm1003_vm2, %v3120_v39  ;;  %v55_v40 = vld [vmem:[%s4832_s0 + $0x100] sm:$0xff]  ;;  %v57_v42 = vld [vmem:[%s4832_s0 + $0x110] sm:$0xff]  ;;  %v58_v43 = vld [vmem:[%s4832_s0 + $0x118] sm:$0xff] }
   0xf   :  { %2225 = vmatprep.mubr.msk.f32.mxu0 %vm99_vm0, %v25_v9  ;;  %v59_v44 = vld [vmem:[%s4832_s0 + $0x120] sm:$0xff]  ;;  %v60_v45 = vld [vmem:[%s4832_s0 + $0x128] sm:$0xff]  ;;  %v61_v46 = vld [vmem:[%s4832_s0 + $0x130] sm:$0xff] }
  0x10   :  { %v62_v47 = vld [vmem:[%s4832_s0 + $0x138] sm:$0xff]  ;;  %v63_v50 = vld [vmem:[%s4832_s0 + $0x140] sm:$0xff]  ;;  %v747_v52 = vld [vmem:[%s4834_s5 + $0x10] sm:$0xff] }
  0x11   :  { %v748_v48 = vld [vmem:[%s4834_s5 + $0x18] sm:$0xff]  ;;  %v755_v53 = vld [vmem:[%s4834_s5 + $0x50] sm:$0xff]  ;;  %v64_v57 = vld [vmem:[%s4832_s0 + $0x148] sm:$0xff] }
  0x12   :  { %2226 = vmatmul.mubr.msk.f32.gmra.mrb[2].mxu0 %vm99_vm0, %v26_v10  ;;  %v756_v49 = vld [vmem:[%s4834_s5 + $0x58] sm:$0xff]  ;;  %v3174_v54 = vpack.c.bf16 %v755_v53, %v747_v52  ;;  %v763_v59 = vld [vmem:[%s4834_s5 + $0x90] sm:$0xff]  ;;  %v67_v7 = vld [vmem:[%s4832_s0 + $0x160] sm:$0xff] }
  0x13   :  { %2228 = vmatprep.mubr.msk.f32.mxu0 %vm99_vm0, %v27_v11  ;;  %v3164_v51 = vpack.c.bf16 %v756_v49, %v748_v48  ;;  %v764_v55 = vld [vmem:[%s4834_s5 + $0x98] sm:$0xff]  ;;  %v771_v60 = vld [vmem:[%s4834_s5 + $0xd0] sm:$0xff]  ;;  %vm3531_vm3 = vmpackc.low %vm1003_vm2, %vm1003_vm2 }
  0x14   :  { %4927 = vst [vmem:[#allocation3_spill] sm:$0xff] %v3174_v54  ;;  %v772_v56 = vld [vmem:[%s4834_s5 + $0xd8] sm:$0xff]  ;;  %v65_v61 = vld [vmem:[%s4832_s0 + $0x150] sm:$0xff]  ;;  %v3198_v62 = vpack.c.bf16 %v771_v60, %v763_v59 }
  0x15   :  { %4926 = vst [vmem:[#allocation2_spill] sm:$0xff] %v3164_v51  ;;  %2439 = vmatprep.subr.bf16.mxu0 %v3164_v51  ;;  %v3186_v58 = vpack.c.bf16 %v772_v56, %v764_v55  ;;  %v780_v63 = vld [vmem:[%s4834_s5 + $0x118] sm:$0xff]  ;;  %v779_v2 = vld [vmem:[%s4834_s5 + $0x110] sm:$0xff] }
  0x16   :  { %2229 = vmatmul.mubr.msk.f32.gmra.mrb[4].mxu0 %vm99_vm0, %v28_v12  ;;  %4929 = vst [vmem:[#allocation5_spill] sm:$0xff] %v3198_v62  ;;  %v788_v0 = vld [vmem:[%s4834_s5 + $0x158] sm:$0xff]  ;;  %v787_v3 = vld [vmem:[%s4834_s5 + $0x150] sm:$0xff]  ;;  %v3244_v12 = vld [vmem:[%s4835_s2] ss:$0 sm:$0xff] }
  0x17   :  { %2231 = vmatprep.mubr.msk.f32.mxu0 %vm99_vm0, %v29_v13  ;;  %4928 = vst [vmem:[#allocation4_spill] sm:$0xff] %v3186_v58  ;;  %2441 = vmatpush1.bf16.msra.mxu0 %v3174_v54  ;;  %v3208_v1 = vpack.c.bf16 %v788_v0, %v780_v63  ;;  %v66_v4 = vld [vmem:[%s4832_s0 + $0x158] sm:$0xff]  ;;  %v3230_v8 = vpack.c.bf16 %v787_v3, %v779_v2  ;;  %v795_v10 = vld [vmem:[%s4834_s5 + $0x190] sm:$0xff]  ;;  %v75_v3 = vld [vmem:[%s4832_s0 + $0x1a0] sm:$0xff] }
  0x18   :  { %2443 = vmatprep.subr.bf16.mxu0 %v3186_v58  ;;  %v796_v5 = vld [vmem:[%s4834_s5 + $0x198] sm:$0xff]  ;;  %v803_v11 = vld [vmem:[%s4834_s5 + $0x1d0] sm:$0xff] }
  0x19   :  { %4930 = vst [vmem:[#allocation6_spill] sm:$0xff] %v3208_v1  ;;  %v804_v6 = vld [vmem:[%s4834_s5 + $0x1d8] sm:$0xff]  ;;  %4931 = vst [vmem:[#allocation7_spill] sm:$0xff] %v3230_v8  ;;  %v843_v53 = vld [vmem:[%s4834_s5 + $0x310] sm:$0xff] }
  0x1a   :  { %2232 = vmatmul.mubr.msk.f32.gmra.mrb[6].mxu0 %vm99_vm0, %v30_v14  ;;  %v3233_v9 = vpack.c.bf16 %v804_v6, %v796_v5  ;;  %v812_v13 = vld [vmem:[%s4834_s5 + $0x218] sm:$0xff]  ;;  %v851_v55 = vld [vmem:[%s4834_s5 + $0x350] sm:$0xff] }
  0x1b   :  { %2234 = vmatprep.mubr.msk.f32.mxu0 %vm99_vm0, %v31_v15  ;;  %2445 = vmatpush1.bf16.msra.mxu0 %v3198_v62  ;;  %v820_v14 = vld [vmem:[%s4834_s5 + $0x258] sm:$0xff]  ;;  %v68_v15 = vld [vmem:[%s4832_s0 + $0x168] sm:$0xff] }
  0x1c   :  { %2447 = vmatprep.subr.bf16.mxu0 %v3208_v1  ;;  %4932 = vst [vmem:[#allocation8_spill] sm:$0xff] %v3233_v9  ;;  %v860_v59 = vld [vmem:[%s4834_s5 + $0x398] sm:$0xff]  ;;  %v2938_v1 = vmov 0  }
  0x1d   :  { %v868_v60 = vld [vmem:[%s4834_s5 + $0x3d8] sm:$0xff]  ;;  %2935 = vset.pattern.permute.xlu0 %v2938_v1 }
  0x1e   :  { %2235 = vmatmul.mubr.msk.f32.gmra.mrb[8].mxu0 %vm99_vm0, %v32_v16  ;;  %v74_v63 = vld [vmem:[%s4832_s0 + $0x198] sm:$0xff] }
  0x1f   :  { %2237 = vmatprep.mubr.msk.f32.mxu0 %vm99_vm0, %v33_v17  ;;  %v69_v17 = vld [vmem:[%s4832_s0 + $0x170] sm:$0xff]  ;;  %2449 = vmatpush1.bf16.msra.mxu0 %v3230_v8 }
  0x20   :  { %2451 = vmatprep.subr.bf16.mxu0 %v3233_v9 }
  0x22   :  { %2238 = vmatmul.mubr.msk.f32.gmra.mrb[10].mxu0 %vm99_vm0, %v34_v18  ;;  %v3261_v18 = vpack.c.bf16 %v803_v11, %v795_v10  ;;  %v859_v10 = vld [vmem:[%s4834_s5 + $0x390] sm:$0xff] }
  0x23   :  { %2240 = vmatprep.mubr.msk.f32.mxu0 %vm99_vm0, %v35_v19  ;;  %v867_v11 = vld [vmem:[%s4834_s5 + $0x3d0] sm:$0xff] }
  0x24   :  { %4933 = vst [vmem:[#allocation9_spill] sm:$0xff] %v3261_v18  ;;  %2453 = vmatpush1.bf16.msra.mxu0 %v3261_v18 }
  0x26   :  { %2241 = vmatmul.mubr.msk.f32.gmra.mrb[12].mxu0 %vm99_vm0, %v36_v20 }
  0x27   :  { %2243 = vmatprep.mubr.msk.f32.mxu0 %vm99_vm0, %v37_v21  ;;  %v3265_v21 = vpack.c.bf16 %v820_v14, %v812_v13 }
  0x29   :  { %4934 = vst [vmem:[#allocation10_spill] sm:$0xff] %v3265_v21  ;;  %2455 = vmatprep.subr.bf16.mxu0 %v3265_v21 }
  0x2a   :  { %2244 = vmatmul.mubr.msk.f32.gmra.mrb[14].mxu0 %vm99_vm0, %v38_v22  ;;  %v811_v22 = vld [vmem:[%s4834_s5 + $0x210] sm:$0xff] }
  0x2b   :  { %2246 = vmatprep.mubr.msk.f32.mxu0 %vm99_vm0, %v39_v23  ;;  %v819_v23 = vld [vmem:[%s4834_s5 + $0x250] sm:$0xff] }
  0x2e   :  { %2247 = vmatmul.mubr.msk.f32.gmra.mrb[16].mxu0 %vm99_vm0, %v40_v24 }
  0x2f   :  { %2249 = vmatprep.mubr.msk.f32.mxu0 %vm99_vm0, %v41_v25  ;;  %v828_v25 = vld [vmem:[%s4834_s5 + $0x298] sm:$0xff] }
  0x32   :  { %2250 = vmatmul.mubr.msk.f32.gmra.mrb[18].mxu0 %vm99_vm0, %v42_v26  ;;  %v836_v26 = vld [vmem:[%s4834_s5 + $0x2d8] sm:$0xff] }
  0x33   :  { %2252 = vmatprep.mubr.msk.f32.mxu0 %vm99_vm0, %v43_v27 }
  0x36   :  { %2253 = vmatmul.mubr.msk.f32.gmra.mrb[20].mxu0 %vm99_vm0, %v44_v28  ;;  %v70_v28 = vld [vmem:[%s4832_s0 + $0x178] sm:$0xff] }
  0x37   :  { %2255 = vmatprep.mubr.msk.f32.mxu0 %vm99_vm0, %v45_v29 }
  0x3a   :  { %2256 = vmatmul.mubr.msk.f32.gmra.mrb[22].mxu0 %vm99_vm0, %v46_v30 }
  0x3b   :  { %2258 = vmatprep.mubr.msk.f32.mxu0 %vm99_vm0, %v47_v31  ;;  %v71_v31 = vld [vmem:[%s4832_s0 + $0x180] sm:$0xff] }
  0x3e   :  { %2259 = vmatmul.mubr.msk.f32.gmra.mrb[24].mxu0 %vm99_vm0, %v48_v32  ;;  %v3289_v32 = vpack.c.bf16 %v819_v23, %v811_v22  ;;  %v77_v23 = vld [vmem:[%s4832_s0 + $0x1b0] sm:$0xff] }
  0x3f   :  { %2261 = vmatprep.mubr.msk.f32.mxu0 %vm99_vm0, %v49_v33 }
  0x40   :  { %4935 = vst [vmem:[#allocation11_spill] sm:$0xff] %v3289_v32  ;;  %2457 = vmatpush1.bf16.msra.mxu0 %v3289_v32 }
  0x42   :  { %2262 = vmatmul.mubr.msk.f32.gmra.mrb[26].mxu0 %vm99_vm0, %v50_v34 }
  0x43   :  { %2264 = vmatprep.mubr.msk.f32.mxu0 %vm99_vm0, %v51_v35  ;;  %v3293_v35 = vpack.c.bf16 %v836_v26, %v828_v25 }
  0x45   :  { %4936 = vst [vmem:[#allocation12_spill] sm:$0xff] %v3293_v35  ;;  %2459 = vmatprep.subr.bf16.mxu0 %v3293_v35 }
  0x46   :  { %2265 = vmatmul.mubr.msk.f32.gmra.mrb[28].mxu0 %vm99_vm0, %v52_v36  ;;  %v827_v36 = vld [vmem:[%s4834_s5 + $0x290] sm:$0xff] }
  0x47   :  { %2267 = vmatprep.mubr.msk.f32.mxu0 %vm99_vm0, %v53_v37  ;;  %v835_v37 = vld [vmem:[%s4834_s5 + $0x2d0] sm:$0xff] }
  0x48   :  { %v3319_v48 = vpack.c.bf16 %v835_v37, %v827_v36  ;;  %v78_v37 = vld [vmem:[%s4832_s0 + $0x1b8] sm:$0xff] }
  0x4a   :  { %2268 = vmatmul.mubr.msk.f32.gmra.mrb[30].mxu0 %vm99_vm0, %v54_v38  ;;  %4937 = vst [vmem:[#allocation13_spill] sm:$0xff] %v3319_v48 }
  0x4b   :  { %2270 = vmatprep.mubr.msk.f32.mxu0 %vm99_vm0, %v55_v40  ;;  %2461 = vmatpush1.bf16.msra.mxu0 %v3319_v48 }
  0x4e   :  { %2271 = vmatmul.mubr.msk.f32.gmra.mrb[32].mxu0 %vm99_vm0, %v56_v41  ;;  %v844_v41 = vld [vmem:[%s4834_s5 + $0x318] sm:$0xff] }
  0x4f   :  { %2273 = vmatprep.mubr.msk.f32.mxu0 %vm99_vm0, %v57_v42  ;;  %v852_v42 = vld [vmem:[%s4834_s5 + $0x358] sm:$0xff] }
  0x50   :  { %v3323_v52 = vpack.c.bf16 %v852_v42, %v844_v41  ;;  %v79_v42 = vld [vmem:[%s4832_s0 + $0x1c0] sm:$0xff] }
  0x52   :  { %2274 = vmatmul.mubr.msk.f32.gmra.mrb[34].mxu0 %vm99_vm0, %v58_v43  ;;  %4938 = vst [vmem:[#allocation14_spill] sm:$0xff] %v3323_v52  ;;  %2463 = vmatprep.subr.bf16.mxu0 %v3323_v52 }
  0x53   :  { %2276 = vmatprep.mubr.msk.f32.mxu0 %vm99_vm0, %v59_v44  ;;  %v72_v44 = vld [vmem:[%s4832_s0 + $0x188] sm:$0xff] }
  0x56   :  { %2277 = vmatmul.mubr.msk.f32.gmra.mrb[36].mxu0 %vm99_vm0, %v60_v45 }
  0x57   :  { %2279 = vmatprep.mubr.msk.f32.mxu0 %vm99_vm0, %v61_v46 }
  0x5a   :  { %2280 = vmatmul.mubr.msk.f32.gmra.mrb[38].mxu0 %vm99_vm0, %v62_v47  ;;  %v73_v47 = vld [vmem:[%s4832_s0 + $0x190] sm:$0xff] }
  0x5b   :  { %2282 = vmatprep.mubr.msk.f32.mxu0 %vm99_vm0, %v63_v50 }
  0x5e   :  { %2283 = vmatmul.mubr.msk.f32.gmra.mrb[40].mxu0 %vm99_vm0, %v64_v57 }
  0x5f   :  { %2285 = vmatprep.mubr.msk.f32.mxu0 %vm99_vm0, %v65_v61 }
  0x62   :  { %2286 = vmatmul.mubr.msk.f32.gmra.mrb[42].mxu0 %vm99_vm0, %v66_v4  ;;  %v3349_v4 = vpack.c.bf16 %v851_v55, %v843_v53  ;;  %v908_v55 = vld [vmem:[%s4834_s5 + $0x518] sm:$0xff] }
  0x63   :  { %2288 = vmatprep.mubr.msk.f32.mxu0 %vm99_vm0, %v67_v7  ;;  %v3353_v7 = vpack.c.bf16 %v868_v60, %v860_v59  ;;  %v80_v60 = vld [vmem:[%s4832_s0 + $0x1c8] sm:$0xff] }
  0x64   :  { %4939 = vst [vmem:[#allocation15_spill] sm:$0xff] %v3349_v4  ;;  %2465 = vmatpush1.bf16.msra.mxu0 %v3349_v4 }
  0x65   :  { %4940 = vst [vmem:[#allocation16_spill] sm:$0xff] %v3353_v7  ;;  %2467 = vmatprep.subr.bf16.mxu0 %v3353_v7 }
  0x66   :  { %2289 = vmatmul.mubr.msk.f32.gmra.mrb[44].mxu0 %vm99_vm0, %v68_v15  ;;  %v876_v15 = vld [vmem:[%s4834_s5 + $0x418] sm:$0xff] }
  0x67   :  { %2291 = vmatprep.mubr.msk.f32.mxu0 %vm99_vm0, %v69_v17 }
  0x6a   :  { %2292 = vmatmul.mubr.msk.f32.gmra.mrb[46].mxu0 %vm99_vm0, %v70_v28  ;;  %v875_v28 = vld [vmem:[%s4834_s5 + $0x410] sm:$0xff] }
  0x6b   :  { %2294 = vmatprep.mubr.msk.f32.mxu0 %vm99_vm0, %v71_v31 }
  0x6e   :  { %2295 = vmatmul.mubr.msk.f32.gmra.mrb[48].mxu0 %vm99_vm0, %v72_v44 }
  0x6f   :  { %2297 = vmatprep.mubr.msk.f32.mxu0 %vm99_vm0, %v73_v47  ;;  %v891_v47 = vld [vmem:[%s4834_s5 + $0x490] sm:$0xff] }
  0x72   :  { %2298 = vmatmul.mubr.msk.f32.gmra.mrb[50].mxu0 %vm99_vm0, %v74_v63 }
  0x73   :  { %2300 = vmatprep.mubr.msk.f32.mxu0 %vm99_vm0, %v75_v3 }
  0xe1   :  { %v2224_v16 = vpop.f32.mrb[0].mxu0 }
  0xe2   :  { %v368_v19 = vadd.f32 %v2224_v16, %v3244_v12  ;;  %v362_v20 = vpop.f32.mrb[1].mxu0  ;;  %v884_v16 = vld [vmem:[%s4834_s5 + $0x458] sm:$0xff] }
  0xe3   :  { %v363_v24 = vadd.f32 %v3244_v12, %v362_v20 }
  0xe4   :  { %v682_v27 = vmax.f32 %v368_v19, 0.0  ;;  %v76_v19 = vld [vmem:[%s4832_s0 + $0x1a8] sm:$0xff] }
  0xe5   :  { %v681_v29 = vmax.f32 %v363_v24, 0.0  ;;  %v2227_v30 = vpop.f32.mrb[2].mxu0  ;;  %v3379_v24 = vpack.c.bf16 %v867_v11, %v859_v10  ;;  %2301 = vmatmul.mubr.msk.f32.gmra.mrb[52].mxu0 %vm99_vm0, %v76_v19  ;;  %v907_v10 = vld [vmem:[%s4834_s5 + $0x510] sm:$0xff] }
  0xe6   :  { %v378_v33 = vadd.f32 %v2227_v30, %v3244_v12  ;;  %v372_v34 = vpop.f32.mrb[3].mxu0  ;;  %2303 = vmatprep.mubr.msk.f32.mxu0 %vm99_vm0, %v77_v23  ;;  %v915_v11 = vld [vmem:[%s4834_s5 + $0x550] sm:$0xff] }
  0xe7   :  { %v3301_v38 = vpack.c.bf16 %v682_v27, %v681_v29  ;;  %v373_v40 = vadd.f32 %v3244_v12, %v372_v34  ;;  %4941 = vst [vmem:[#allocation17_spill] sm:$0xff] %v3379_v24  ;;  %v3383_v27 = vpack.c.bf16 %v884_v16, %v876_v15  ;;  %v883_v29 = vld [vmem:[%s4834_s5 + $0x450] sm:$0xff]  ;;  %v900_v34 = vld [vmem:[%s4834_s5 + $0x4d8] sm:$0xff]  ;;  %2469 = vmatpush1.bf16.msra.mxu0 %v3379_v24 }
  0xe8   :  { %v684_v43 = vmax.f32 %v378_v33, 0.0  ;;  %v892_v33 = vld [vmem:[%s4834_s5 + $0x498] sm:$0xff] }
  0xe9   :  { %v683_v45 = vmax.f32 %v373_v40, 0.0  ;;  %v2230_v46 = vpop.f32.mrb[4].mxu0  ;;  %4942 = vst [vmem:[#allocation18_spill] sm:$0xff] %v3383_v27  ;;  %2471 = vmatprep.subr.bf16.mxu0 %v3383_v27  ;;  %2304 = vmatmul.mubr.msk.f32.gmra.mrb[54].mxu0 %vm99_vm0, %v78_v37  ;;  %v924_v16 = vld [vmem:[%s4834_s5 + $0x598] sm:$0xff] }
  0xea   :  { %v388_v49 = vadd.f32 %v2230_v46, %v3244_v12  ;;  %v382_v50 = vpop.f32.mrb[5].mxu0  ;;  %v3413_v46 = vpack.c.bf16 %v900_v34, %v892_v33  ;;  %2306 = vmatprep.mubr.msk.f32.mxu0 %vm99_vm0, %v79_v42  ;;  %v923_v33 = vld [vmem:[%s4834_s5 + $0x590] sm:$0xff] }
  0xeb   :  { %v3331_v56 = vpack.c.bf16 %v684_v43, %v683_v45  ;;  %v383_v57 = vadd.f32 %v3244_v12, %v382_v50  ;;  %v3409_v43 = vpack.c.bf16 %v883_v29, %v875_v28  ;;  %v931_v34 = vld [vmem:[%s4834_s5 + $0x5d0] sm:$0xff] }
  0xec   :  { %v686_v61 = vmax.f32 %v388_v49, 0.0  ;;  %4944 = vst [vmem:[#allocation20_spill] sm:$0xff] %v3413_v46  ;;  %v899_v49 = vld [vmem:[%s4834_s5 + $0x4d0] sm:$0xff] }
  0xed   :  { %v685_v0 = vmax.f32 %v383_v57, 0.0  ;;  %v2233_v2 = vpop.f32.mrb[6].mxu0  ;;  %4943 = vst [vmem:[#allocation19_spill] sm:$0xff] %v3409_v43  ;;  %v916_v57 = vld [vmem:[%s4834_s5 + $0x558] sm:$0xff]  ;;  %2473 = vmatpush1.bf16.msra.mxu0 %v3409_v43 }
  0xee   :  { %v398_v5 = vadd.f32 %v2233_v2, %v3244_v12  ;;  %v392_v6 = vpop.f32.mrb[7].mxu0  ;;  %v3439_v2 = vpack.c.bf16 %v899_v49, %v891_v47  ;;  %2475 = vmatprep.subr.bf16.mxu0 %v3413_v46  ;;  %2307 = vmatmul.mubr.msk.f32.gmra.mrb[56].mxu0 %vm99_vm0, %v80_v60  ;;  %v85_v49 = vld [vmem:[%s4832_s0 + $0x1f0] sm:$0xff] }
  0xef   :  { %v3361_v13 = vpack.c.bf16 %v686_v61, %v685_v0  ;;  %v393_v14 = vadd.f32 %v3244_v12, %v392_v6  ;;  %v81_v0 = vld [vmem:[%s4832_s0 + $0x1d0] sm:$0xff]  ;;  %v3443_v6 = vpack.c.bf16 %v916_v57, %v908_v55 }
  0xf0   :  { %v688_v17 = vmax.f32 %v398_v5, 0.0  ;;  %4945 = vst [vmem:[#allocation21_spill] sm:$0xff] %v3439_v2  ;;  %2309 = vmatprep.mubr.msk.f32.mxu0 %vm99_vm0, %v81_v0  ;;  %v939_v60 = vld [vmem:[%s4834_s5 + $0x610] sm:$0xff] }
  0xf1   :  { %v687_v20 = vmax.f32 %v393_v14, 0.0  ;;  %v2236_v22 = vpop.f32.mrb[8].mxu0  ;;  %4946 = vst [vmem:[#allocation22_spill] sm:$0xff] %v3443_v6  ;;  %2477 = vmatpush1.bf16.msra.mxu0 %v3439_v2 }
  0xf2   :  { %v408_v25 = vadd.f32 %v2236_v22, %v3244_v12  ;;  %v402_v26 = vpop.f32.mrb[9].mxu0  ;;  %2479 = vmatprep.subr.bf16.mxu0 %v3443_v6 }
  0xf3   :  { %v3391_v30 = vpack.c.bf16 %v688_v17, %v687_v20  ;;  %v403_v31 = vadd.f32 %v3244_v12, %v402_v26  ;;  %v932_v17 = vld [vmem:[%s4834_s5 + $0x5d8] sm:$0xff]  ;;  %v3469_v26 = vpack.c.bf16 %v915_v11, %v907_v10 }
  0xf4   :  { %v690_v36 = vmax.f32 %v408_v25, 0.0  ;;  %v82_v20 = vld [vmem:[%s4832_s0 + $0x1d8] sm:$0xff]  ;;  %v83_v25 = vld [vmem:[%s4832_s0 + $0x1e0] sm:$0xff] }
  0xf5   :  { %v689_v40 = vmax.f32 %v403_v31, 0.0  ;;  %v2239_v41 = vpop.f32.mrb[10].mxu0  ;;  %4947 = vst [vmem:[#allocation23_spill] sm:$0xff] %v3469_v26  ;;  %v3473_v31 = vpack.c.bf16 %v932_v17, %v924_v16  ;;  %2310 = vmatmul.mubr.msk.f32.gmra.mrb[58].mxu0 %vm99_vm0, %v82_v20  ;;  %v86_v11 = vld [vmem:[%s4832_s0 + $0x1f8] sm:$0xff] }
  0xf6   :  { %v418_v44 = vadd.f32 %v2239_v41, %v3244_v12  ;;  %v412_v45 = vpop.f32.mrb[11].mxu0  ;;  %v948_v41 = vld [vmem:[%s4834_s5 + $0x658] sm:$0xff]  ;;  %2312 = vmatprep.mubr.msk.f32.mxu0 %vm99_vm0, %v83_v25  ;;  %2481 = vmatpush1.bf16.msra.mxu0 %v3469_v26  ;;  %v955_v25 = vld [vmem:[%s4834_s5 + $0x690] sm:$0xff] }
  0xf7   :  { %v3421_v50 = vpack.c.bf16 %v690_v36, %v689_v40  ;;  %v413_v53 = vadd.f32 %v3244_v12, %v412_v45  ;;  %4948 = vst [vmem:[#allocation24_spill] sm:$0xff] %v3473_v31  ;;  %v940_v40 = vld [vmem:[%s4834_s5 + $0x618] sm:$0xff]  ;;  %2483 = vmatprep.subr.bf16.mxu0 %v3473_v31 }
  0xf8   :  { %v692_v59 = vmax.f32 %v418_v44, 0.0  ;;  %v84_v44 = vld [vmem:[%s4832_s0 + $0x1e8] sm:$0xff] }
  0xf9   :  { %v691_v61 = vmax.f32 %v413_v53, 0.0  ;;  %v2242_v63 = vpop.f32.mrb[12].mxu0  ;;  %v3499_v53 = vpack.c.bf16 %v931_v34, %v923_v33  ;;  %2313 = vmatmul.mubr.msk.f32.gmra.mrb[60].mxu0 %vm99_vm0, %v84_v44  ;;  %v972_v34 = vld [vmem:[%s4834_s5 + $0x718] sm:$0xff] }
  0xfa   :  { %v428_v3 = vadd.f32 %v2242_v63, %v3244_v12  ;;  %v422_v5 = vpop.f32.mrb[13].mxu0  ;;  %2315 = vmatprep.mubr.msk.f32.mxu0 %vm99_vm0, %v85_v49 }
  0xfb   :  { %v3451_v14 = vpack.c.bf16 %v692_v59, %v691_v61  ;;  %v423_v15 = vadd.f32 %v3244_v12, %v422_v5  ;;  %4949 = vst [vmem:[#allocation25_spill] sm:$0xff] %v3499_v53  ;;  %v3503_v59 = vpack.c.bf16 %v948_v41, %v940_v40  ;;  %v947_v61 = vld [vmem:[%s4834_s5 + $0x650] sm:$0xff]  ;;  %v964_v5 = vld [vmem:[%s4834_s5 + $0x6d8] sm:$0xff]  ;;  %2485 = vmatpush1.bf16.msra.mxu0 %v3499_v53 }
  0xfc   :  { %v694_v19 = vmax.f32 %v428_v3, 0.0  ;;  %v956_v3 = vld [vmem:[%s4834_s5 + $0x698] sm:$0xff]  ;;  %v3526_v17 = vpack.c.bf16 %v947_v61, %v939_v60 }
  0xfd   :  { %v693_v22 = vmax.f32 %v423_v15, 0.0  ;;  %v2245_v23 = vpop.f32.mrb[14].mxu0  ;;  %4950 = vst [vmem:[#allocation26_spill] sm:$0xff] %v3503_v59  ;;  %2487 = vmatprep.subr.bf16.mxu0 %v3503_v59  ;;  %2316 = vmatmul.mubr.msk.f32.gmra.mrb[62].mxu0 %vm99_vm0, %v86_v11 }
  0xfe   :  { %v438_v28 = vadd.f32 %v2245_v23, %v3244_v12  ;;  %v432_v29 = vpop.f32.mrb[15].mxu0  ;;  %4951 = vst [vmem:[#allocation27_spill] sm:$0xff] %v3526_v17  ;;  %v3536_v23 = vpack.c.bf16 %v964_v5, %v956_v3 }
  0xff   :  { %v3481_v36 = vpack.c.bf16 %v694_v19, %v693_v22  ;;  %v433_v37 = vadd.f32 %v3244_v12, %v432_v29  ;;  %2489 = vmatpush1.bf16.msra.mxu0 %v3526_v17  ;;  %v993_v17 = vld [vmem:[%s4834_s5 + $0x7c0] sm:$0xff]  ;;  %v5031_v22 = vld [vmem:[#allocation9_spill] sm:$0xff] }
 0x100   :  { %v696_v42 = vmax.f32 %v438_v28, 0.0  ;;  %4954 = vst [vmem:[#allocation28_spill] sm:$0xff] %v3536_v23  ;;  %v963_v28 = vld [vmem:[%s4834_s5 + $0x6d0] sm:$0xff]  ;;  %2491 = vmatprep.subr.bf16.mxu0 %v3536_v23  ;;  %v986_v23 = vld [vmem:[%s4834_s5 + $0x788] sm:$0xff] }
 0x101   :  { %v695_v45 = vmax.f32 %v433_v37, 0.0  ;;  %v2248_v47 = vpop.f32.mrb[16].mxu0  ;;  %v980_v37 = vld [vmem:[%s4834_s5 + $0x758] sm:$0xff]  ;;  %v3555_v44 = vpack.c.bf16 %v963_v28, %v955_v25  ;;  %v995_v25 = vld [vmem:[%s4834_s5 + $0x7d0] sm:$0xff] }
 0x102   :  { %v448_v55 = vadd.f32 %v2248_v47, %v3244_v12  ;;  %v442_v57 = vpop.f32.mrb[17].mxu0  ;;  %v3562_v49 = vpack.c.bf16 %v980_v37, %v972_v34 }
 0x103   :  { %v3511_v63 = vpack.c.bf16 %v696_v42, %v695_v45  ;;  %v443_v0 = vadd.f32 %v3244_v12, %v442_v57  ;;  %4955 = vst [vmem:[#allocation29_spill] sm:$0xff] %v3555_v44  ;;  %v979_v57 = vld [vmem:[%s4834_s5 + $0x750] sm:$0xff]  ;;  %2493 = vmatpush1.bf16.msra.mxu0 %v3555_v44  ;;  %v977_v44 = vld [vmem:[%s4834_s5 + $0x740] sm:$0xff] }
 0x104   :  { %v698_v10 = vmax.f32 %v448_v55, 0.0  ;;  %4956 = vst [vmem:[#allocation30_spill] sm:$0xff] %v3562_v49  ;;  %v971_v55 = vld [vmem:[%s4834_s5 + $0x710] sm:$0xff]  ;;  %2495 = vmatprep.subr.bf16.mxu0 %v3562_v49  ;;  %v970_v49 = vld [vmem:[%s4834_s5 + $0x708] sm:$0xff] }
 0x105   :  { %v697_v15 = vmax.f32 %v443_v0, 0.0  ;;  %v2251_v16 = vpop.f32.mrb[18].mxu0  ;;  %v996_v0 = vld [vmem:[%s4834_s5 + $0x7d8] sm:$0xff]  ;;  %v3580_v11 = vpack.c.bf16 %v979_v57, %v971_v55 }
 0x106   :  { %v458_v19 = vadd.f32 %v2251_v16, %v3244_v12  ;;  %v452_v20 = vpop.f32.mrb[19].mxu0 }
 0x107   :  { %v453_v29 = vadd.f32 %v3244_v12, %v452_v20  ;;  %v2326_v33 = vpack.c.bf16 %v698_v10, %v697_v15  ;;  %4957 = vst [vmem:[#allocation31_spill] sm:$0xff] %v3580_v11  ;;  %v987_v20 = vld [vmem:[%s4834_s5 + $0x790] sm:$0xff]  ;;  %2497 = vmatpush1.bf16.msra.mxu0 %v3580_v11  ;;  %v961_v11 = vld [vmem:[%s4834_s5 + $0x6c0] sm:$0xff] }
 0x108   :  { %v700_v40 = vmax.f32 %v458_v19, 0.0 }
 0x109   :  { %v699_v41 = vmax.f32 %v453_v29, 0.0  ;;  %2328 = vmatprep.subr.msk.bf16.mxu1 %vm3531_vm3, %v2326_v33  ;;  %v2254_v42 = vpop.f32.mrb[20].mxu0 }
 0x10a   :  { %2331 = vmatpush3.bf16.xpose.msk.msra.mxu1 %vm3531_vm3, %v3301_v38  ;;  %v468_v45 = vadd.f32 %v2254_v42, %v3244_v12  ;;  %v462_v47 = vpop.f32.mrb[21].mxu0  ;;  %v988_v38 = vld [vmem:[%s4834_s5 + $0x798] sm:$0xff] }
 0x10b   :  { %v2332_v60 = vpack.c.bf16 %v700_v40, %v699_v41  ;;  %v463_v61 = vadd.f32 %v3244_v12, %v462_v47  ;;  %v3584_v19 = vpack.c.bf16 %v996_v0, %v988_v38  ;;  %v3594_v40 = vpack.c.bf16 %v995_v25, %v987_v20 }
 0x10c   :  { %v702_v3 = vmax.f32 %v468_v45, 0.0 }
 0x10d   :  { %2334 = vmatprep.subr.msk.bf16.mxu1 %vm3531_vm3, %v2332_v60  ;;  %v701_v5 = vmax.f32 %v463_v61, 0.0  ;;  %v2257_v10 = vpop.f32.mrb[22].mxu0  ;;  %4958 = vst [vmem:[#allocation32_spill] sm:$0xff] %v3584_v19  ;;  %4959 = vst [vmem:[#allocation33_spill] sm:$0xff] %v3594_v40  ;;  %2499 = vmatprep.subr.bf16.mxu0 %v3584_v19  ;;  %v954_v19 = vld [vmem:[%s4834_s5 + $0x688] sm:$0xff] }
 0x10e   :  { %v478_v15 = vadd.f32 %v2257_v10, %v3244_v12  ;;  %v472_v16 = vpop.f32.mrb[23].mxu0  ;;  %2501 = vmatpush1.bf16.msra.mxu0 %v3594_v40  ;;  %v945_v40 = vld [vmem:[%s4834_s5 + $0x640] sm:$0xff] }
 0x10f   :  { %v2338_v28 = vpack.c.bf16 %v702_v3, %v701_v5  ;;  %v473_v29 = vadd.f32 %v3244_v12, %v472_v16 }
 0x110   :  { %v704_v33 = vmax.f32 %v478_v15, 0.0 }
 0x111   :  { %v703_v34 = vmax.f32 %v473_v29, 0.0  ;;  %v2260_v37 = vpop.f32.mrb[24].mxu0 }
 0x112   :  { %2337 = vmatpush3.bf16.xpose.msk.msra.mxu1 %vm3531_vm3, %v3331_v56  ;;  %v488_v41 = vadd.f32 %v2260_v37, %v3244_v12  ;;  %v482_v42 = vpop.f32.mrb[25].mxu0 }
 0x113   :  { %2340 = vmatprep.subr.msk.bf16.mxu1 %vm3531_vm3, %v2338_v28  ;;  %v2344_v45 = vpack.c.bf16 %v704_v33, %v703_v34  ;;  %v483_v47 = vadd.f32 %v3244_v12, %v482_v42 }
 0x114   :  { %v706_v55 = vmax.f32 %v488_v41, 0.0 }
 0x115   :  { %v705_v57 = vmax.f32 %v483_v47, 0.0  ;;  %v2263_v60 = vpop.f32.mrb[26].mxu0 }
 0x116   :  { %v498_v61 = vadd.f32 %v2263_v60, %v3244_v12  ;;  %v492_v38 = vpop.f32.mrb[27].mxu0  ;;  %v770_v60 = vld [vmem:[%s4834_s5 + $0xc8] sm:$0xff] }
 0x117   :  { %v2350_v56 = vpack.c.bf16 %v706_v55, %v705_v57  ;;  %v493_v0 = vadd.f32 %v3244_v12, %v492_v38  ;;  %v762_v57 = vld [vmem:[%s4834_s5 + $0x88] sm:$0xff]  ;;  %v761_v38 = vld [vmem:[%s4834_s5 + $0x80] sm:$0xff] }
 0x118   :  { %v708_v3 = vmax.f32 %v498_v61, 0.0 }
 0x119   :  { %v707_v5 = vmax.f32 %v493_v0, 0.0  ;;  %v2266_v10 = vpop.f32.mrb[28].mxu0  ;;  %v778_v0 = vld [vmem:[%s4834_s5 + $0x108] sm:$0xff] }
 0x11a   :  { %2343 = vmatpush3.bf16.xpose.msk.msra.mxu1 %vm3531_vm3, %v3361_v13  ;;  %v508_v15 = vadd.f32 %v2266_v10, %v3244_v12  ;;  %v502_v16 = vpop.f32.mrb[29].mxu0 }
 0x11b   :  { %2346 = vmatprep.subr.msk.bf16.mxu1 %vm3531_vm3, %v2344_v45  ;;  %v2356_v20 = vpack.c.bf16 %v708_v3, %v707_v5  ;;  %v503_v25 = vadd.f32 %v3244_v12, %v502_v16  ;;  %v786_v3 = vld [vmem:[%s4834_s5 + $0x148] sm:$0xff]  ;;  %v785_v16 = vld [vmem:[%s4834_s5 + $0x140] sm:$0xff] }
 0x11c   :  { %v710_v28 = vmax.f32 %v508_v15, 0.0  ;;  %v3682_v10 = vpack.c.bf16 %v786_v3, %v778_v0  ;;  %v777_v15 = vld [vmem:[%s4834_s5 + $0x100] sm:$0xff] }
 0x11d   :  { %v709_v29 = vmax.f32 %v503_v25, 0.0  ;;  %v2269_v33 = vpop.f32.mrb[30].mxu0  ;;  %v3697_v25 = vpack.c.bf16 %v785_v16, %v777_v15  ;;  %v841_v3 = vld [vmem:[%s4834_s5 + $0x300] sm:$0xff]  ;;  %v858_v16 = vld [vmem:[%s4834_s5 + $0x388] sm:$0xff] }
 0x11e   :  { %v518_v34 = vadd.f32 %v2269_v33, %v3244_v12  ;;  %v512_v37 = vpop.f32.mrb[31].mxu0  ;;  %v801_v33 = vld [vmem:[%s4834_s5 + $0x1c0] sm:$0xff] }
 0x11f   :  { %v2362_v41 = vpack.c.bf16 %v710_v28, %v709_v29  ;;  %v513_v42 = vadd.f32 %v3244_v12, %v512_v37  ;;  %v793_v29 = vld [vmem:[%s4834_s5 + $0x180] sm:$0xff]  ;;  %v818_v37 = vld [vmem:[%s4834_s5 + $0x248] sm:$0xff] }
 0x120   :  { %v712_v47 = vmax.f32 %v518_v34, 0.0  ;;  %v810_v34 = vld [vmem:[%s4834_s5 + $0x208] sm:$0xff]  ;;  %v849_v15 = vld [vmem:[%s4834_s5 + $0x340] sm:$0xff] }
 0x121   :  { %v711_v13 = vmax.f32 %v513_v42, 0.0  ;;  %v3718_v42 = vpack.c.bf16 %v818_v37, %v810_v34  ;;  %v865_v34 = vld [vmem:[%s4834_s5 + $0x3c0] sm:$0xff]  ;;  %v874_v37 = vld [vmem:[%s4834_s5 + $0x408] sm:$0xff]  ;;  %v2272_v53 = vpop.f32.mrb[32].mxu0 }
 0x122   :  { %2349 = vmatpush3.bf16.xpose.msk.msra.mxu1 %vm3531_vm3, %v3391_v30  ;;  %v746_v30 = vld [vmem:[%s4834_s5 + $0x8] sm:$0xff]  ;;  %v528_v31 = vadd.f32 %v2272_v53, %v3244_v12  ;;  %v522_v26 = vpop.f32.mrb[33].mxu0 }
 0x123   :  { %2352 = vmatprep.subr.msk.bf16.mxu1 %vm3531_vm3, %v2350_v56  ;;  %v2368_v45 = vpack.c.bf16 %v712_v47, %v711_v13  ;;  %v769_v56 = vld [vmem:[%s4834_s5 + $0xc0] sm:$0xff]  ;;  %v523_v6 = vadd.f32 %v3244_v12, %v522_v26 }
 0x124   :  { %v3679_v5 = vpack.c.bf16 %v769_v56, %v761_v38  ;;  %v809_v47 = vld [vmem:[%s4834_s5 + $0x200] sm:$0xff]  ;;  %v850_v38 = vld [vmem:[%s4834_s5 + $0x348] sm:$0xff]  ;;  %v714_v2 = vmax.f32 %v528_v31, 0.0 }
 0x125   :  { %v817_v13 = vld [vmem:[%s4834_s5 + $0x240] sm:$0xff]  ;;  %v713_v46 = vmax.f32 %v523_v6, 0.0 }
 0x127   :  { %v3950_v27 = vpack.c.bf16 %v714_v2, %v713_v46 }
 0x12a   :  { %2355 = vmatpush3.bf16.xpose.msk.msra.mxu1 %vm3531_vm3, %v3421_v50  ;;  %v754_v50 = vld [vmem:[%s4834_s5 + $0x48] sm:$0xff] }
 0x12b   :  { %2358 = vmatprep.subr.msk.bf16.mxu1 %vm3531_vm3, %v2356_v20  ;;  %v3642_v55 = vpack.c.bf16 %v754_v50, %v746_v30  ;;  %v802_v20 = vld [vmem:[%s4834_s5 + $0x1c8] sm:$0xff]  ;;  %v3733_v50 = vpack.c.bf16 %v817_v13, %v809_v47 }
 0x12c   :  { %v834_v30 = vld [vmem:[%s4834_s5 + $0x2c8] sm:$0xff] }
 0x12d   :  { %v882_v47 = vld [vmem:[%s4834_s5 + $0x448] sm:$0xff] }
 0x132   :  { %2361 = vmatpush3.bf16.xpose.msk.msra.mxu1 %vm3531_vm3, %v3451_v14  ;;  %v745_v14 = vld [vmem:[%s4834_s5] sm:$0xff] }
 0x133   :  { %2364 = vmatprep.subr.msk.bf16.mxu1 %vm3531_vm3, %v2362_v41  ;;  %v3715_v41 = vpack.c.bf16 %v801_v33, %v793_v29  ;;  %v857_v33 = vld [vmem:[%s4834_s5 + $0x380] sm:$0xff] }
 0x134   :  { %v3787_v13 = vpack.c.bf16 %v865_v34, %v857_v33  ;;  %v914_v33 = vld [vmem:[%s4834_s5 + $0x548] sm:$0xff] }
 0x13a   :  { %2367 = vmatpush3.bf16.xpose.msk.msra.mxu1 %vm3531_vm3, %v3481_v36  ;;  %v753_v36 = vld [vmem:[%s4834_s5 + $0x40] sm:$0xff] }
 0x13b   :  { %2370 = vmatprep.subr.msk.bf16.mxu1 %vm3531_vm3, %v2368_v45  ;;  %v3660_v61 = vpack.c.bf16 %v753_v36, %v745_v14  ;;  %v826_v45 = vld [vmem:[%s4834_s5 + $0x288] sm:$0xff]  ;;  %v825_v36 = vld [vmem:[%s4834_s5 + $0x280] sm:$0xff] }
 0x13c   :  { %v3736_v14 = vpack.c.bf16 %v834_v30, %v826_v45  ;;  %v3790_v45 = vpack.c.bf16 %v882_v47, %v874_v37  ;;  %v873_v30 = vld [vmem:[%s4834_s5 + $0x400] sm:$0xff] }
 0x13d   :  { %v905_v47 = vld [vmem:[%s4834_s5 + $0x500] sm:$0xff] }
 0x142   :  { %2373 = vmatpush3.bf16.xpose.msk.msra.mxu1 %vm3531_vm3, %v3511_v63  ;;  %v3662_v63 = vpack.c.bf16 %v770_v60, %v762_v57  ;;  %v833_v57 = vld [vmem:[%s4834_s5 + $0x2c0] sm:$0xff]  ;;  %v842_v60 = vld [vmem:[%s4834_s5 + $0x308] sm:$0xff] }
 0x143   :  { %2375 = vmatprep.subr.bf16.mxu1 %v3642_v55  ;;  %v3751_v56 = vpack.c.bf16 %v833_v57, %v825_v36  ;;  %v3754_v0 = vpack.c.bf16 %v850_v38, %v842_v60  ;;  %v881_v36 = vld [vmem:[%s4834_s5 + $0x440] sm:$0xff]  ;;  %v890_v57 = vld [vmem:[%s4834_s5 + $0x488] sm:$0xff] }
 0x144   :  { %v898_v60 = vld [vmem:[%s4834_s5 + $0x4c8] sm:$0xff]  ;;  %v3805_v38 = vpack.c.bf16 %v881_v36, %v873_v30  ;;  %v913_v30 = vld [vmem:[%s4834_s5 + $0x540] sm:$0xff] }
 0x145   :  { %v922_v36 = vld [vmem:[%s4834_s5 + $0x588] sm:$0xff] }
 0x149   :  { %2177 = vmatmul.mubr.msk.f32.vlgmr.msra.gmra.mrb[0].mxu1 %vm1003_vm2, %v3120_v39  ;;  %v794_v39 = vld [vmem:[%s4834_s5 + $0x188] sm:$0xff] }
 0x14a   :  { %2377 = vmatpush1.bf16.msra.mxu1 %v3660_v61  ;;  %v3700_v28 = vpack.c.bf16 %v802_v20, %v794_v39  ;;  %v866_v39 = vld [vmem:[%s4834_s5 + $0x3c8] sm:$0xff]  ;;  %v3769_v20 = vpack.c.bf16 %v849_v15, %v841_v3  ;;  %v3808_v3 = vpack.c.bf16 %v898_v60, %v890_v57  ;;  %v889_v15 = vld [vmem:[%s4834_s5 + $0x480] sm:$0xff]  ;;  %v3841_v60 = vpack.c.bf16 %v913_v30, %v905_v47 }
 0x14b   :  { %2379 = vmatprep.subr.bf16.mxu1 %v3662_v63  ;;  %v3772_v29 = vpack.c.bf16 %v866_v39, %v858_v16  ;;  %v897_v16 = vld [vmem:[%s4834_s5 + $0x4c0] sm:$0xff]  ;;  %v906_v39 = vld [vmem:[%s4834_s5 + $0x508] sm:$0xff] }
 0x14c   :  { %v3823_v34 = vpack.c.bf16 %v897_v16, %v889_v15  ;;  %v3826_v37 = vpack.c.bf16 %v914_v33, %v906_v39  ;;  %v930_v57 = vld [vmem:[%s4834_s5 + $0x5c8] sm:$0xff]  ;;  %v921_v16 = vld [vmem:[%s4834_s5 + $0x580] sm:$0xff] }
 0x14d   :  { %v3844_v15 = vpack.c.bf16 %v930_v57, %v922_v36  ;;  %v929_v39 = vld [vmem:[%s4834_s5 + $0x5c0] sm:$0xff]  ;;  %v938_v33 = vld [vmem:[%s4834_s5 + $0x608] sm:$0xff] }
 0x14e   :  { %2381 = vmatpush1.bf16.msra.mxu1 %v3679_v5  ;;  %v946_v47 = vld [vmem:[%s4834_s5 + $0x648] sm:$0xff]  ;;  %v3859_v30 = vpack.c.bf16 %v929_v39, %v921_v16  ;;  %v937_v57 = vld [vmem:[%s4834_s5 + $0x600] sm:$0xff] }
 0x14f   :  { %2383 = vmatprep.subr.bf16.mxu1 %v3682_v10  ;;  %v3862_v36 = vpack.c.bf16 %v946_v47, %v938_v33  ;;  %v962_v16 = vld [vmem:[%s4834_s5 + $0x6c8] sm:$0xff]  ;;  %v3877_v39 = vpack.c.bf16 %v945_v40, %v937_v57  ;;  %v953_v47 = vld [vmem:[%s4834_s5 + $0x680] sm:$0xff] }
 0x150   :  { %v3880_v33 = vpack.c.bf16 %v962_v16, %v954_v19  ;;  %v978_v40 = vld [vmem:[%s4834_s5 + $0x748] sm:$0xff]  ;;  %v3895_v19 = vpack.c.bf16 %v961_v11, %v953_v47  ;;  %v969_v16 = vld [vmem:[%s4834_s5 + $0x700] sm:$0xff] }
 0x151   :  { %v3898_v57 = vpack.c.bf16 %v978_v40, %v970_v49  ;;  %v994_v11 = vld [vmem:[%s4834_s5 + $0x7c8] sm:$0xff]  ;;  %v3913_v49 = vpack.c.bf16 %v977_v44, %v969_v16  ;;  %v985_v40 = vld [vmem:[%s4834_s5 + $0x780] sm:$0xff]  ;;  %v752_v16 = vld [vmem:[%s4834_s5 + $0x38] sm:$0xff] }
 0x152   :  { %2385 = vmatpush1.bf16.msra.mxu1 %v3697_v25  ;;  %v3916_v47 = vpack.c.bf16 %v994_v11, %v986_v23  ;;  %v3925_v59 = vpack.c.bf16 %v993_v17, %v985_v40  ;;  %v750_v23 = vld [vmem:[%s4834_s5 + $0x28] sm:$0xff]  ;;  %v760_v17 = vld [vmem:[%s4834_s5 + $0x78] sm:$0xff] }
 0x153   :  { %2387 = vmatprep.subr.bf16.mxu1 %v3700_v28  ;;  %4960 = vst [vmem:[#allocation34_spill] sm:$0xff] %v3913_v49  ;;  %v758_v44 = vld [vmem:[%s4834_s5 + $0x68] sm:$0xff]  ;;  %v3943_v40 = vpack.c.bf16 %v760_v17, %v752_v16 }
 0x154   :  { %4961 = vst [vmem:[#allocation35_spill] sm:$0xff] %v3916_v47  ;;  %4962 = vst [vmem:[#allocation36_spill] sm:$0xff] %v3925_v59  ;;  %v3938_v11 = vpack.c.bf16 %v758_v44, %v750_v23  ;;  %v2275_v23 = vpop.f32.mrb[34].mxu0 }
 0x155   :  { %4964 = vst [vmem:[#allocation38_spill] sm:$0xff] %v3943_v40  ;;  %2567 = vmatprep.subr.bf16.mxu0 %v3943_v40  ;;  %v538_v44 = vadd.f32 %v2275_v23, %v3244_v12  ;;  %v532_v43 = vpop.f32.mrb[35].mxu0 }
 0x156   :  { %2389 = vmatpush1.bf16.msra.mxu1 %v3715_v41  ;;  %4963 = vst [vmem:[#allocation37_spill] sm:$0xff] %v3938_v11  ;;  %v533_v16 = vadd.f32 %v3244_v12, %v532_v43  ;;  %v2278_v7 = vpop.f32.mrb[36].mxu0 }
 0x157   :  { %2391 = vmatprep.subr.bf16.mxu1 %v3718_v42  ;;  %v716_v17 = vmax.f32 %v538_v44, 0.0  ;;  %v548_v40 = vadd.f32 %v2278_v7, %v3244_v12  ;;  %v542_v4 = vpop.f32.mrb[37].mxu0 }
 0x158   :  { %v715_v24 = vmax.f32 %v533_v16, 0.0  ;;  %v543_v26 = vadd.f32 %v3244_v12, %v542_v4  ;;  %v2281_v52 = vpop.f32.mrb[38].mxu0 }
 0x159   :  { %v718_v31 = vmax.f32 %v548_v40, 0.0  ;;  %v558_v23 = vadd.f32 %v2281_v52, %v3244_v12  ;;  %v552_v48 = vpop.f32.mrb[39].mxu0 }
 0x15a   :  { %2393 = vmatpush1.bf16.msra.mxu1 %v3733_v50  ;;  %v3954_v53 = vpack.c.bf16 %v716_v17, %v715_v24  ;;  %v717_v6 = vmax.f32 %v543_v26, 0.0  ;;  %v553_v43 = vadd.f32 %v3244_v12, %v552_v48  ;;  %v2284_v16 = vpop.f32.mrb[40].mxu0 }
 0x15b   :  { %2395 = vmatprep.subr.bf16.mxu1 %v3736_v14  ;;  %v720_v2 = vmax.f32 %v558_v23, 0.0  ;;  %v568_v7 = vadd.f32 %v2284_v16, %v3244_v12  ;;  %v562_v35 = vpop.f32.mrb[41].mxu0 }
 0x15c   :  { %v3958_v46 = vpack.c.bf16 %v718_v31, %v717_v6  ;;  %v719_v44 = vmax.f32 %v553_v43, 0.0  ;;  %v563_v4 = vadd.f32 %v3244_v12, %v562_v35  ;;  %v2287_v26 = vpop.f32.mrb[42].mxu0 }
 0x15d   :  { %v722_v40 = vmax.f32 %v568_v7, 0.0  ;;  %v578_v52 = vadd.f32 %v2287_v26, %v3244_v12  ;;  %v572_v32 = vpop.f32.mrb[43].mxu0 }
 0x15e   :  { %2397 = vmatpush1.bf16.msra.mxu1 %v3751_v56  ;;  %v3962_v24 = vpack.c.bf16 %v720_v2, %v719_v44  ;;  %v721_v17 = vmax.f32 %v563_v4, 0.0  ;;  %v573_v48 = vadd.f32 %v3244_v12, %v572_v32  ;;  %v2290_v43 = vpop.f32.mrb[44].mxu0 }
 0x15f   :  { %2399 = vmatprep.subr.bf16.mxu1 %v3754_v0  ;;  %v724_v6 = vmax.f32 %v578_v52, 0.0  ;;  %v588_v16 = vadd.f32 %v2290_v43, %v3244_v12  ;;  %v582_v21 = vpop.f32.mrb[45].mxu0 }
 0x160   :  { %v3966_v31 = vpack.c.bf16 %v722_v40, %v721_v17  ;;  %v723_v23 = vmax.f32 %v573_v48, 0.0  ;;  %v583_v35 = vadd.f32 %v3244_v12, %v582_v21  ;;  %v2293_v4 = vpop.f32.mrb[46].mxu0 }
 0x161   :  { %v726_v44 = vmax.f32 %v588_v16, 0.0  ;;  %v598_v26 = vadd.f32 %v2293_v4, %v3244_v12  ;;  %v592_v18 = vpop.f32.mrb[47].mxu0 }
 0x162   :  { %2401 = vmatpush1.bf16.msra.mxu1 %v3769_v20  ;;  %v3970_v2 = vpack.c.bf16 %v724_v6, %v723_v23  ;;  %v725_v7 = vmax.f32 %v583_v35, 0.0  ;;  %v593_v32 = vadd.f32 %v3244_v12, %v592_v18  ;;  %v2296_v48 = vpop.f32.mrb[48].mxu0 }
 0x163   :  { %2403 = vmatprep.subr.bf16.mxu1 %v3772_v29  ;;  %v728_v17 = vmax.f32 %v598_v26, 0.0  ;;  %v608_v43 = vadd.f32 %v2296_v48, %v3244_v12  ;;  %v602_v9 = vpop.f32.mrb[49].mxu0 }
 0x164   :  { %v3974_v40 = vpack.c.bf16 %v726_v44, %v725_v7  ;;  %v727_v52 = vmax.f32 %v593_v32, 0.0  ;;  %v603_v21 = vadd.f32 %v3244_v12, %v602_v9  ;;  %v2299_v4 = vpop.f32.mrb[50].mxu0 }
 0x165   :  { %v730_v23 = vmax.f32 %v608_v43, 0.0  ;;  %v618_v44 = vadd.f32 %v2299_v4, %v3244_v12  ;;  %v612_v7 = vpop.f32.mrb[51].mxu0 }
 0x166   :  { %2405 = vmatpush1.bf16.msra.mxu1 %v3787_v13  ;;  %v3978_v6 = vpack.c.bf16 %v728_v17, %v727_v52  ;;  %v729_v16 = vmax.f32 %v603_v21, 0.0  ;;  %v613_v18 = vadd.f32 %v3244_v12, %v612_v7 }
 0x167   :  { %2407 = vmatprep.subr.bf16.mxu1 %v3790_v45  ;;  %v732_v26 = vmax.f32 %v618_v44, 0.0  ;;  %v1002_v44 = vld [vmem:[%s4836_s4] sm:$0x1f] }
 0x168   :  { %4965 = vst [vmem:[#allocation39_spill] sm:$0xff] %v3978_v6  ;;  %v3981_v35 = vpack.c.bf16 %v730_v23, %v729_v16  ;;  %v731_v32 = vmax.f32 %v613_v18, 0.0  ;;  %1176 = vperm.xlu0 %2935, %v1002_v44   ;;  %v790_v6 = vld [vmem:[%s4834_s5 + $0x168] sm:$0xff] }
 0x16a   :  { %2409 = vmatpush1.bf16.msra.mxu1 %v3805_v38  ;;  %v3985_v8 = vpack.c.bf16 %v732_v26, %v731_v32 }
 0x16b   :  { %2411 = vmatprep.subr.bf16.mxu1 %v3808_v3 }
 0x16e   :  { %2413 = vmatpush1.bf16.msra.mxu1 %v3823_v34 }
 0x16f   :  { %2415 = vmatprep.subr.bf16.mxu1 %v3826_v37 }
 0x172   :  { %2417 = vmatpush1.bf16.msra.mxu1 %v3841_v60 }
 0x173   :  { %2419 = vmatprep.subr.bf16.mxu1 %v3844_v15 }
 0x176   :  { %2421 = vmatpush1.bf16.msra.mxu1 %v3859_v30 }
 0x177   :  { %2423 = vmatprep.subr.bf16.mxu1 %v3862_v36 }
 0x17a   :  { %2425 = vmatpush1.bf16.msra.mxu1 %v3877_v39 }
 0x17b   :  { %2427 = vmatprep.subr.bf16.mxu1 %v3880_v33 }
 0x17e   :  { %2429 = vmatpush1.bf16.msra.mxu1 %v3895_v19 }
 0x17f   :  { %2431 = vmatprep.subr.bf16.mxu1 %v3898_v57 }
 0x182   :  { %2433 = vmatpush1.bf16.msra.mxu1 %v3913_v49 }
 0x183   :  { %2435 = vmatprep.subr.bf16.mxu1 %v3916_v47  ;;  %v792_v47 = vld [vmem:[%s4834_s5 + $0x178] sm:$0xff] }
 0x186   :  { %2437 = vmatpush1.bf16.msra.mxu1 %v3925_v59  ;;  %v784_v59 = vld [vmem:[%s4834_s5 + $0x138] sm:$0xff] }
 0x187   :  { %2503 = vmatprep.subr.bf16.mxu1 %v3938_v11  ;;  %v767_v11 = vld [vmem:[%s4834_s5 + $0xb0] sm:$0xff] }
 0x1b8   :  { %v2302_v48 = vpop.f32.mrb[52].mxu0 }
 0x1b9   :  { %v628_v17 = vadd.f32 %v2302_v48, %v3244_v12  ;;  %v622_v52 = vpop.f32.mrb[53].mxu0 }
 0x1ba   :  { %v623_v9 = vadd.f32 %v3244_v12, %v622_v52 }
 0x1bb   :  { %v734_v43 = vmax.f32 %v628_v17, 0.0 }
 0x1bc   :  { %v733_v21 = vmax.f32 %v623_v9, 0.0  ;;  %v2305_v16 = vpop.f32.mrb[54].mxu0 }
 0x1bd   :  { %v638_v4 = vadd.f32 %v2305_v16, %v3244_v12  ;;  %v632_v7 = vpop.f32.mrb[55].mxu0 }
 0x1be   :  { %v3989_v23 = vpack.c.bf16 %v734_v43, %v733_v21  ;;  %v633_v18 = vadd.f32 %v3244_v12, %v632_v7 }
 0x1bf   :  { %v736_v26 = vmax.f32 %v638_v4, 0.0 }
 0x1c0   :  { %v735_v32 = vmax.f32 %v633_v18, 0.0 }
 0x1c1   :  { %v2308_v17 = vpop.f32.mrb[56].mxu0 }
 0x1c2   :  { %v3996_v48 = vpack.c.bf16 %v736_v26, %v735_v32  ;;  %v648_v52 = vadd.f32 %v2308_v17, %v3244_v12  ;;  %v642_v9 = vpop.f32.mrb[57].mxu0 }
 0x1c3   :  { %v643_v1 = vadd.f32 %v3244_v12, %v642_v9 }
 0x1c4   :  { %v738_v43 = vmax.f32 %v648_v52, 0.0  ;;  %v2936_v52 = vld [vmem:[%s4835_s2] ss:$0 sm:$0xff] }
 0x1c5   :  { %v737_v21 = vmax.f32 %v643_v1, 0.0 }
 0x1c7   :  { %v4000_v16 = vpack.c.bf16 %v738_v43, %v737_v21 }
 0x1c8   :  { %v2311_v62 = vpop.f32.mrb[58].mxu0 }
 0x1c9   :  { %v658_v58 = vadd.f32 %v2311_v62, %v3244_v12  ;;  %v652_v54 = vpop.f32.mrb[59].mxu0 }
 0x1ca   :  { %v653_v4 = vadd.f32 %v3244_v12, %v652_v54 }
 0x1cb   :  { %v740_v7 = vmax.f32 %v658_v58, 0.0 }
 0x1cc   :  { %v739_v44 = vmax.f32 %v653_v4, 0.0  ;;  %v2314_v26 = vpop.f32.mrb[60].mxu0 }
 0x1cd   :  { %v668_v32 = vadd.f32 %v2314_v26, %v3244_v12  ;;  %v662_v17 = vpop.f32.mrb[61].mxu0  ;;  %v749_v12 = vld [vmem:[%s4834_s5 + $0x20] sm:$0xff] }
 0x1ce   :  { %v4004_v18 = vpack.c.bf16 %v740_v7, %v739_v44  ;;  %v663_v9 = vadd.f32 %v2936_v52, %v662_v17  ;;  %v757_v26 = vld [vmem:[%s4834_s5 + $0x60] sm:$0xff]  ;;  %v759_v17 = vld [vmem:[%s4834_s5 + $0x70] sm:$0xff] }
 0x1cf   :  { %v742_v1 = vmax.f32 %v668_v32, 0.0  ;;  %v751_v32 = vld [vmem:[%s4834_s5 + $0x30] sm:$0xff] }
 0x1d0   :  { %v741_v43 = vmax.f32 %v663_v9, 0.0  ;;  %v2317_v62 = vpop.f32.mrb[62].mxu0  ;;  %v768_v9 = vld [vmem:[%s4834_s5 + $0xb8] sm:$0xff] }
 0x1d1   :  { %v678_v51 = vadd.f32 %v2936_v52, %v2317_v62  ;;  %v672_v54 = vpop.f32.mrb[63].mxu0  ;;  %v4040_v62 = vpack.c.bf16 %v757_v26, %v749_v12  ;;  %v775_v12 = vld [vmem:[%s4834_s5 + $0xf0] sm:$0xff]  ;;  %v782_v26 = vld [vmem:[%s4834_s5 + $0x128] sm:$0xff] }
 0x1d2   :  { %v4010_v21 = vpack.c.bf16 %v742_v1, %v741_v43  ;;  %v673_v58 = vadd.f32 %v2936_v52, %v672_v54  ;;  %v774_v52 = vld [vmem:[%s4834_s5 + $0xe8] sm:$0xff]  ;;  %v776_v1 = vld [vmem:[%s4834_s5 + $0xf8] sm:$0xff]  ;;  %v4042_v54 = vpack.c.bf16 %v759_v17, %v751_v32  ;;  %v4086_v49 = vpack.c.bf16 %v790_v6, %v782_v26  ;;  %v797_v26 = vld [vmem:[%s4834_s5 + $0x1a0] sm:$0xff] }
 0x1d3   :  { %v744_v4 = vmax.f32 %v678_v51, 0.0  ;;  %v766_v51 = vld [vmem:[%s4834_s5 + $0xa8] sm:$0xff]  ;;  %v4061_v17 = vpack.c.bf16 %v776_v1, %v768_v9  ;;  %v781_v9 = vld [vmem:[%s4834_s5 + $0x120] sm:$0xff]  ;;  %v808_v6 = vld [vmem:[%s4834_s5 + $0x1f8] sm:$0xff] }
 0x1d4   :  { %v743_v7 = vmax.f32 %v673_v58, 0.0  ;;  %v765_v58 = vld [vmem:[%s4834_s5 + $0xa0] sm:$0xff]  ;;  %v4059_v32 = vpack.c.bf16 %v774_v52, %v766_v51  ;;  %v4078_v52 = vpack.c.bf16 %v775_v12, %v767_v11  ;;  %4971 = vst [vmem:[#allocation45_spill] sm:$0xff] %v4086_v49  ;;  %v791_v11 = vld [vmem:[%s4834_s5 + $0x170] sm:$0xff] }
 0x1d5   :  { %4968 = vst [vmem:[#allocation42_spill] sm:$0xff] %v4061_v17  ;;  %v789_v1 = vld [vmem:[%s4834_s5 + $0x160] sm:$0xff] }
 0x1d6   :  { %v4012_v44 = vpack.c.bf16 %v744_v4, %v743_v7  ;;  %v773_v4 = vld [vmem:[%s4834_s5 + $0xe0] sm:$0xff]  ;;  %4967 = vst [vmem:[#allocation41_spill] sm:$0xff] %v4059_v32  ;;  %4970 = vst [vmem:[#allocation44_spill] sm:$0xff] %v4078_v52 }
 0x1d7   :  { %v4076_v51 = vpack.c.bf16 %v773_v4, %v765_v58  ;;  %v783_v58 = vld [vmem:[%s4834_s5 + $0x130] sm:$0xff]  ;;  %v798_v4 = vld [vmem:[%s4834_s5 + $0x1a8] sm:$0xff] }
 0x1d8   :  { %4966 = vst [vmem:[#allocation40_spill] sm:$0xff] %v4012_v44  ;;  %v4088_v44 = vpack.c.bf16 %v792_v47, %v784_v59  ;;  %v806_v59 = vld [vmem:[%s4834_s5 + $0x1e8] sm:$0xff]  ;;  %v800_v47 = vld [vmem:[%s4834_s5 + $0x1b8] sm:$0xff]  ;;  %v4114_v12 = vpack.c.bf16 %v791_v11, %v783_v58 }
 0x1d9   :  { %4969 = vst [vmem:[#allocation43_spill] sm:$0xff] %v4076_v51  ;;  %v814_v58 = vld [vmem:[%s4834_s5 + $0x228] sm:$0xff] }
 0x1da   :  { %4972 = vst [vmem:[#allocation46_spill] sm:$0xff] %v4088_v44  ;;  %4974 = vst [vmem:[#allocation48_spill] sm:$0xff] %v4114_v12  ;;  %v822_v11 = vld [vmem:[%s4834_s5 + $0x268] sm:$0xff] }
 0x21c   :  { %v4038_v43 = vpop.f32.mrb[0].mxu1 }
 0x21d   :  { %v1171_v7 = vpop.f32.mrb[1].mxu1 }
 0x21e   :  { %1243 = vmatprep.mubr.f32.mxu1 %v1171_v7  ;;  %1314 = vmatprep.mubr.f32.mxu0 %v1171_v7 }
 0x21f   :  { %1244 = vmatmul.mubr.f32.vlgmr.msra.gmra.mrb[2].mxu1 %v4038_v43  ;;  %1315 = vmatmul.mubr.f32.vlgmr.msra.gmra.mrb[64].mxu0 %v4038_v43 }
 0x220   :  { %2505 = vmatpush1.bf16.msra.mxu1 %v4040_v62  ;;  %2569 = vmatpush1.bf16.msra.mxu0 %v4042_v54 }
 0x221   :  { %1385 = vmatprep.mubr.f32.mxu1 %v1171_v7  ;;  %1456 = vmatprep.mubr.f32.mxu0 %v1171_v7  ;;  %v4112_v7 = vpack.c.bf16 %v789_v1, %v781_v9  ;;  %v799_v9 = vld [vmem:[%s4834_s5 + $0x1b0] sm:$0xff] }
 0x222   :  { %2507 = vmatprep.subr.bf16.mxu1 %v4059_v32  ;;  %2571 = vmatprep.subr.bf16.mxu0 %v4061_v17  ;;  %v805_v17 = vld [vmem:[%s4834_s5 + $0x1e0] sm:$0xff]  ;;  %v4124_v32 = vpack.c.bf16 %v806_v59, %v798_v4  ;;  %v807_v1 = vld [vmem:[%s4834_s5 + $0x1f0] sm:$0xff]  ;;  %v816_v4 = vld [vmem:[%s4834_s5 + $0x238] sm:$0xff] }
 0x223   :  { %4973 = vst [vmem:[#allocation47_spill] sm:$0xff] %v4112_v7  ;;  %v824_v59 = vld [vmem:[%s4834_s5 + $0x278] sm:$0xff] }
 0x224   :  { %2509 = vmatpush1.bf16.msra.mxu1 %v4076_v51  ;;  %2573 = vmatpush1.bf16.msra.mxu0 %v4078_v52  ;;  %4975 = vst [vmem:[#allocation49_spill] sm:$0xff] %v4124_v32  ;;  %v4126_v51 = vpack.c.bf16 %v808_v6, %v800_v47  ;;  %v4148_v47 = vpack.c.bf16 %v805_v17, %v797_v26  ;;  %v815_v17 = vld [vmem:[%s4834_s5 + $0x230] sm:$0xff] }
 0x225   :  { %2511 = vmatprep.subr.bf16.mxu1 %v4086_v49  ;;  %2575 = vmatprep.subr.bf16.mxu0 %v4088_v44  ;;  %v4150_v6 = vpack.c.bf16 %v807_v1, %v799_v9  ;;  %v813_v44 = vld [vmem:[%s4834_s5 + $0x220] sm:$0xff]  ;;  %v4160_v52 = vpack.c.bf16 %v822_v11, %v814_v58  ;;  %v823_v26 = vld [vmem:[%s4834_s5 + $0x270] sm:$0xff]  ;;  %v830_v9 = vld [vmem:[%s4834_s5 + $0x2a8] sm:$0xff] }
 0x226   :  { %4976 = vst [vmem:[#allocation50_spill] sm:$0xff] %v4126_v51  ;;  %4977 = vst [vmem:[#allocation51_spill] sm:$0xff] %v4148_v47  ;;  %v821_v49 = vld [vmem:[%s4834_s5 + $0x260] sm:$0xff]  ;;  %v838_v1 = vld [vmem:[%s4834_s5 + $0x2e8] sm:$0xff] }
 0x227   :  { %4978 = vst [vmem:[#allocation52_spill] sm:$0xff] %v4150_v6  ;;  %4979 = vst [vmem:[#allocation53_spill] sm:$0xff] %v4160_v52  ;;  %v832_v58 = vld [vmem:[%s4834_s5 + $0x2b8] sm:$0xff] }
 0x228   :  { %2513 = vmatpush1.bf16.msra.mxu1 %v4112_v7  ;;  %2577 = vmatpush1.bf16.msra.mxu0 %v4114_v12  ;;  %v4162_v7 = vpack.c.bf16 %v824_v59, %v816_v4  ;;  %v840_v11 = vld [vmem:[%s4834_s5 + $0x2f8] sm:$0xff]  ;;  %v4184_v4 = vpack.c.bf16 %v821_v49, %v813_v44  ;;  %v4186_v59 = vpack.c.bf16 %v823_v26, %v815_v17  ;;  %v831_v49 = vld [vmem:[%s4834_s5 + $0x2b0] sm:$0xff]  ;;  %v846_v17 = vld [vmem:[%s4834_s5 + $0x328] sm:$0xff] }
 0x229   :  { %2515 = vmatprep.subr.bf16.mxu1 %v4124_v32  ;;  %2579 = vmatprep.subr.bf16.mxu0 %v4126_v51  ;;  %v829_v51 = vld [vmem:[%s4834_s5 + $0x2a0] sm:$0xff]  ;;  %v4196_v12 = vpack.c.bf16 %v838_v1, %v830_v9  ;;  %v839_v44 = vld [vmem:[%s4834_s5 + $0x2f0] sm:$0xff]  ;;  %v854_v26 = vld [vmem:[%s4834_s5 + $0x368] sm:$0xff] }
 0x22a   :  { %4980 = vst [vmem:[#allocation54_spill] sm:$0xff] %v4162_v7  ;;  %4981 = vst [vmem:[#allocation55_spill] sm:$0xff] %v4184_v4  ;;  %v837_v32 = vld [vmem:[%s4834_s5 + $0x2e0] sm:$0xff]  ;;  %v848_v9 = vld [vmem:[%s4834_s5 + $0x338] sm:$0xff] }
 0x22b   :  { %4982 = vst [vmem:[#allocation56_spill] sm:$0xff] %v4186_v59  ;;  %4983 = vst [vmem:[#allocation57_spill] sm:$0xff] %v4196_v12  ;;  %v856_v1 = vld [vmem:[%s4834_s5 + $0x378] sm:$0xff] }
 0x22c   :  { %2517 = vmatpush1.bf16.msra.mxu1 %v4148_v47  ;;  %2581 = vmatpush1.bf16.msra.mxu0 %v4150_v6  ;;  %v4198_v47 = vpack.c.bf16 %v840_v11, %v832_v58  ;;  %v4220_v58 = vpack.c.bf16 %v837_v32, %v829_v51  ;;  %v4222_v11 = vpack.c.bf16 %v839_v44, %v831_v49  ;;  %v847_v32 = vld [vmem:[%s4834_s5 + $0x330] sm:$0xff]  ;;  %v862_v49 = vld [vmem:[%s4834_s5 + $0x3a8] sm:$0xff] }
 0x22d   :  { %2519 = vmatprep.subr.bf16.mxu1 %v4160_v52  ;;  %2583 = vmatprep.subr.bf16.mxu0 %v4162_v7  ;;  %v845_v7 = vld [vmem:[%s4834_s5 + $0x320] sm:$0xff]  ;;  %v4232_v6 = vpack.c.bf16 %v854_v26, %v846_v17  ;;  %v855_v51 = vld [vmem:[%s4834_s5 + $0x370] sm:$0xff]  ;;  %v870_v44 = vld [vmem:[%s4834_s5 + $0x3e8] sm:$0xff] }
 0x22e   :  { %4984 = vst [vmem:[#allocation58_spill] sm:$0xff] %v4198_v47  ;;  %4985 = vst [vmem:[#allocation59_spill] sm:$0xff] %v4220_v58  ;;  %v853_v52 = vld [vmem:[%s4834_s5 + $0x360] sm:$0xff]  ;;  %v864_v17 = vld [vmem:[%s4834_s5 + $0x3b8] sm:$0xff] }
 0x22f   :  { %4986 = vst [vmem:[#allocation60_spill] sm:$0xff] %v4222_v11  ;;  %4987 = vst [vmem:[#allocation61_spill] sm:$0xff] %v4232_v6  ;;  %v872_v26 = vld [vmem:[%s4834_s5 + $0x3f8] sm:$0xff] }
 0x230   :  { %2521 = vmatpush1.bf16.msra.mxu1 %v4184_v4  ;;  %2585 = vmatpush1.bf16.msra.mxu0 %v4186_v59  ;;  %v4234_v4 = vpack.c.bf16 %v856_v1, %v848_v9  ;;  %v4256_v9 = vpack.c.bf16 %v853_v52, %v845_v7  ;;  %v4258_v1 = vpack.c.bf16 %v855_v51, %v847_v32  ;;  %v863_v52 = vld [vmem:[%s4834_s5 + $0x3b0] sm:$0xff]  ;;  %v878_v32 = vld [vmem:[%s4834_s5 + $0x428] sm:$0xff] }
 0x231   :  { %2523 = vmatprep.subr.bf16.mxu1 %v4196_v12  ;;  %2587 = vmatprep.subr.bf16.mxu0 %v4198_v47  ;;  %v861_v47 = vld [vmem:[%s4834_s5 + $0x3a0] sm:$0xff]  ;;  %v4268_v59 = vpack.c.bf16 %v870_v44, %v862_v49  ;;  %v871_v7 = vld [vmem:[%s4834_s5 + $0x3f0] sm:$0xff]  ;;  %v886_v51 = vld [vmem:[%s4834_s5 + $0x468] sm:$0xff] }
 0x232   :  { %4988 = vst [vmem:[#allocation62_spill] sm:$0xff] %v4234_v4  ;;  %4989 = vst [vmem:[#allocation63_spill] sm:$0xff] %v4256_v9  ;;  %v869_v12 = vld [vmem:[%s4834_s5 + $0x3e0] sm:$0xff]  ;;  %v880_v49 = vld [vmem:[%s4834_s5 + $0x438] sm:$0xff] }
 0x233   :  { %4990 = vst [vmem:[#allocation64_spill] sm:$0xff] %v4258_v1  ;;  %4991 = vst [vmem:[#allocation65_spill] sm:$0xff] %v4268_v59  ;;  %v888_v44 = vld [vmem:[%s4834_s5 + $0x478] sm:$0xff] }
 0x234   :  { %2525 = vmatpush1.bf16.msra.mxu1 %v4220_v58  ;;  %2589 = vmatpush1.bf16.msra.mxu0 %v4222_v11  ;;  %v4270_v58 = vpack.c.bf16 %v872_v26, %v864_v17  ;;  %v4292_v17 = vpack.c.bf16 %v869_v12, %v861_v47  ;;  %v4294_v26 = vpack.c.bf16 %v871_v7, %v863_v52  ;;  %v879_v12 = vld [vmem:[%s4834_s5 + $0x430] sm:$0xff]  ;;  %v894_v52 = vld [vmem:[%s4834_s5 + $0x4a8] sm:$0xff] }
 0x235   :  { %2527 = vmatprep.subr.bf16.mxu1 %v4232_v6  ;;  %2591 = vmatprep.subr.bf16.mxu0 %v4234_v4  ;;  %v877_v4 = vld [vmem:[%s4834_s5 + $0x420] sm:$0xff]  ;;  %v4304_v11 = vpack.c.bf16 %v886_v51, %v878_v32  ;;  %v887_v47 = vld [vmem:[%s4834_s5 + $0x470] sm:$0xff]  ;;  %v902_v7 = vld [vmem:[%s4834_s5 + $0x4e8] sm:$0xff] }
 0x236   :  { %4992 = vst [vmem:[#allocation66_spill] sm:$0xff] %v4270_v58  ;;  %4993 = vst [vmem:[#allocation67_spill] sm:$0xff] %v4292_v17  ;;  %v885_v6 = vld [vmem:[%s4834_s5 + $0x460] sm:$0xff]  ;;  %v896_v32 = vld [vmem:[%s4834_s5 + $0x4b8] sm:$0xff] }
 0x237   :  { %4994 = vst [vmem:[#allocation68_spill] sm:$0xff] %v4294_v26  ;;  %4995 = vst [vmem:[#allocation69_spill] sm:$0xff] %v4304_v11  ;;  %v904_v51 = vld [vmem:[%s4834_s5 + $0x4f8] sm:$0xff] }
 0x238   :  { %2529 = vmatpush1.bf16.msra.mxu1 %v4256_v9  ;;  %2593 = vmatpush1.bf16.msra.mxu0 %v4258_v1  ;;  %v4306_v9 = vpack.c.bf16 %v888_v44, %v880_v49  ;;  %v4328_v49 = vpack.c.bf16 %v885_v6, %v877_v4  ;;  %v4330_v44 = vpack.c.bf16 %v887_v47, %v879_v12  ;;  %v895_v6 = vld [vmem:[%s4834_s5 + $0x4b0] sm:$0xff]  ;;  %v910_v12 = vld [vmem:[%s4834_s5 + $0x528] sm:$0xff] }
 0x239   :  { %2531 = vmatprep.subr.bf16.mxu1 %v4268_v59  ;;  %2595 = vmatprep.subr.bf16.mxu0 %v4270_v58  ;;  %v893_v58 = vld [vmem:[%s4834_s5 + $0x4a0] sm:$0xff]  ;;  %v4340_v1 = vpack.c.bf16 %v902_v7, %v894_v52  ;;  %v903_v4 = vld [vmem:[%s4834_s5 + $0x4f0] sm:$0xff]  ;;  %v918_v47 = vld [vmem:[%s4834_s5 + $0x568] sm:$0xff] }
 0x23a   :  { %4996 = vst [vmem:[#allocation70_spill] sm:$0xff] %v4306_v9  ;;  %4997 = vst [vmem:[#allocation71_spill] sm:$0xff] %v4328_v49  ;;  %v901_v59 = vld [vmem:[%s4834_s5 + $0x4e0] sm:$0xff]  ;;  %v912_v52 = vld [vmem:[%s4834_s5 + $0x538] sm:$0xff] }
 0x23b   :  { %4998 = vst [vmem:[#allocation72_spill] sm:$0xff] %v4330_v44  ;;  %4999 = vst [vmem:[#allocation73_spill] sm:$0xff] %v4340_v1  ;;  %v920_v7 = vld [vmem:[%s4834_s5 + $0x578] sm:$0xff] }
 0x23c   :  { %2533 = vmatpush1.bf16.msra.mxu1 %v4292_v17  ;;  %2597 = vmatpush1.bf16.msra.mxu0 %v4294_v26  ;;  %v4342_v17 = vpack.c.bf16 %v904_v51, %v896_v32  ;;  %v4364_v32 = vpack.c.bf16 %v901_v59, %v893_v58  ;;  %v4366_v51 = vpack.c.bf16 %v903_v4, %v895_v6  ;;  %v911_v59 = vld [vmem:[%s4834_s5 + $0x530] sm:$0xff]  ;;  %v926_v6 = vld [vmem:[%s4834_s5 + $0x5a8] sm:$0xff] }
 0x23d   :  { %2535 = vmatprep.subr.bf16.mxu1 %v4304_v11  ;;  %2599 = vmatprep.subr.bf16.mxu0 %v4306_v9  ;;  %v909_v9 = vld [vmem:[%s4834_s5 + $0x520] sm:$0xff]  ;;  %v4376_v26 = vpack.c.bf16 %v918_v47, %v910_v12  ;;  %v919_v58 = vld [vmem:[%s4834_s5 + $0x570] sm:$0xff]  ;;  %v934_v4 = vld [vmem:[%s4834_s5 + $0x5e8] sm:$0xff] }
 0x23e   :  { %5000 = vst [vmem:[#allocation74_spill] sm:$0xff] %v4342_v17  ;;  %5001 = vst [vmem:[#allocation75_spill] sm:$0xff] %v4364_v32  ;;  %v917_v11 = vld [vmem:[%s4834_s5 + $0x560] sm:$0xff]  ;;  %v928_v12 = vld [vmem:[%s4834_s5 + $0x5b8] sm:$0xff] }
 0x23f   :  { %5002 = vst [vmem:[#allocation76_spill] sm:$0xff] %v4366_v51  ;;  %5003 = vst [vmem:[#allocation77_spill] sm:$0xff] %v4376_v26  ;;  %v936_v47 = vld [vmem:[%s4834_s5 + $0x5f8] sm:$0xff] }
 0x240   :  { %2537 = vmatpush1.bf16.msra.mxu1 %v4328_v49  ;;  %2601 = vmatpush1.bf16.msra.mxu0 %v4330_v44  ;;  %v4378_v49 = vpack.c.bf16 %v920_v7, %v912_v52  ;;  %v4400_v52 = vpack.c.bf16 %v917_v11, %v909_v9  ;;  %v4402_v7 = vpack.c.bf16 %v919_v58, %v911_v59  ;;  %v927_v11 = vld [vmem:[%s4834_s5 + $0x5b0] sm:$0xff]  ;;  %v942_v59 = vld [vmem:[%s4834_s5 + $0x628] sm:$0xff] }
 0x241   :  { %2539 = vmatprep.subr.bf16.mxu1 %v4340_v1  ;;  %2603 = vmatprep.subr.bf16.mxu0 %v4342_v17  ;;  %v925_v17 = vld [vmem:[%s4834_s5 + $0x5a0] sm:$0xff]  ;;  %v4412_v44 = vpack.c.bf16 %v934_v4, %v926_v6  ;;  %v935_v9 = vld [vmem:[%s4834_s5 + $0x5f0] sm:$0xff]  ;;  %v950_v58 = vld [vmem:[%s4834_s5 + $0x668] sm:$0xff] }
 0x242   :  { %5004 = vst [vmem:[#allocation78_spill] sm:$0xff] %v4378_v49  ;;  %5005 = vst [vmem:[#allocation79_spill] sm:$0xff] %v4400_v52  ;;  %v933_v1 = vld [vmem:[%s4834_s5 + $0x5e0] sm:$0xff]  ;;  %v944_v6 = vld [vmem:[%s4834_s5 + $0x638] sm:$0xff] }
 0x243   :  { %5006 = vst [vmem:[#allocation80_spill] sm:$0xff] %v4402_v7  ;;  %5007 = vst [vmem:[#allocation81_spill] sm:$0xff] %v4412_v44  ;;  %v952_v4 = vld [vmem:[%s4834_s5 + $0x678] sm:$0xff] }
 0x244   :  { %2541 = vmatpush1.bf16.msra.mxu1 %v4364_v32  ;;  %2605 = vmatpush1.bf16.msra.mxu0 %v4366_v51  ;;  %v4414_v32 = vpack.c.bf16 %v936_v47, %v928_v12  ;;  %v4436_v12 = vpack.c.bf16 %v933_v1, %v925_v17  ;;  %v4438_v47 = vpack.c.bf16 %v935_v9, %v927_v11  ;;  %v943_v1 = vld [vmem:[%s4834_s5 + $0x630] sm:$0xff]  ;;  %v958_v11 = vld [vmem:[%s4834_s5 + $0x6a8] sm:$0xff] }
 0x245   :  { %2543 = vmatprep.subr.bf16.mxu1 %v4376_v26  ;;  %2607 = vmatprep.subr.bf16.mxu0 %v4378_v49  ;;  %v941_v49 = vld [vmem:[%s4834_s5 + $0x620] sm:$0xff]  ;;  %v4448_v51 = vpack.c.bf16 %v950_v58, %v942_v59  ;;  %v951_v17 = vld [vmem:[%s4834_s5 + $0x670] sm:$0xff]  ;;  %v966_v9 = vld [vmem:[%s4834_s5 + $0x6e8] sm:$0xff] }
 0x246   :  { %5008 = vst [vmem:[#allocation82_spill] sm:$0xff] %v4414_v32  ;;  %5009 = vst [vmem:[#allocation83_spill] sm:$0xff] %v4436_v12  ;;  %v949_v26 = vld [vmem:[%s4834_s5 + $0x660] sm:$0xff]  ;;  %v960_v59 = vld [vmem:[%s4834_s5 + $0x6b8] sm:$0xff] }
 0x247   :  { %5010 = vst [vmem:[#allocation84_spill] sm:$0xff] %v4438_v47  ;;  %5011 = vst [vmem:[#allocation85_spill] sm:$0xff] %v4448_v51  ;;  %v968_v58 = vld [vmem:[%s4834_s5 + $0x6f8] sm:$0xff] }
 0x248   :  { %2545 = vmatpush1.bf16.msra.mxu1 %v4400_v52  ;;  %2609 = vmatpush1.bf16.msra.mxu0 %v4402_v7  ;;  %v4450_v52 = vpack.c.bf16 %v952_v4, %v944_v6  ;;  %v4472_v6 = vpack.c.bf16 %v949_v26, %v941_v49  ;;  %v4474_v4 = vpack.c.bf16 %v951_v17, %v943_v1  ;;  %v959_v26 = vld [vmem:[%s4834_s5 + $0x6b0] sm:$0xff]  ;;  %v974_v1 = vld [vmem:[%s4834_s5 + $0x728] sm:$0xff] }
 0x249   :  { %2547 = vmatprep.subr.bf16.mxu1 %v4412_v44  ;;  %2611 = vmatprep.subr.bf16.mxu0 %v4414_v32  ;;  %v957_v32 = vld [vmem:[%s4834_s5 + $0x6a0] sm:$0xff]  ;;  %v4484_v7 = vpack.c.bf16 %v966_v9, %v958_v11  ;;  %v967_v49 = vld [vmem:[%s4834_s5 + $0x6f0] sm:$0xff]  ;;  %v982_v17 = vld [vmem:[%s4834_s5 + $0x768] sm:$0xff] }
 0x24a   :  { %5012 = vst [vmem:[#allocation86_spill] sm:$0xff] %v4450_v52  ;;  %5013 = vst [vmem:[#allocation87_spill] sm:$0xff] %v4472_v6  ;;  %v965_v44 = vld [vmem:[%s4834_s5 + $0x6e0] sm:$0xff]  ;;  %v976_v11 = vld [vmem:[%s4834_s5 + $0x738] sm:$0xff] }
 0x24b   :  { %5014 = vst [vmem:[#allocation88_spill] sm:$0xff] %v4474_v4  ;;  %5015 = vst [vmem:[#allocation89_spill] sm:$0xff] %v4484_v7  ;;  %v984_v9 = vld [vmem:[%s4834_s5 + $0x778] sm:$0xff] }
 0x24c   :  { %2549 = vmatpush1.bf16.msra.mxu1 %v4436_v12  ;;  %2613 = vmatpush1.bf16.msra.mxu0 %v4438_v47  ;;  %v4486_v12 = vpack.c.bf16 %v968_v58, %v960_v59  ;;  %v4508_v59 = vpack.c.bf16 %v965_v44, %v957_v32  ;;  %v4510_v58 = vpack.c.bf16 %v967_v49, %v959_v26  ;;  %v975_v44 = vld [vmem:[%s4834_s5 + $0x730] sm:$0xff]  ;;  %v990_v26 = vld [vmem:[%s4834_s5 + $0x7a8] sm:$0xff] }
 0x24d   :  { %2551 = vmatprep.subr.bf16.mxu1 %v4448_v51  ;;  %2615 = vmatprep.subr.bf16.mxu0 %v4450_v52  ;;  %v973_v52 = vld [vmem:[%s4834_s5 + $0x720] sm:$0xff]  ;;  %v4520_v47 = vpack.c.bf16 %v982_v17, %v974_v1  ;;  %v983_v32 = vld [vmem:[%s4834_s5 + $0x770] sm:$0xff]  ;;  %v998_v49 = vld [vmem:[%s4834_s5 + $0x7e8] sm:$0xff] }
 0x24e   :  { %5016 = vst [vmem:[#allocation90_spill] sm:$0xff] %v4486_v12  ;;  %5017 = vst [vmem:[#allocation91_spill] sm:$0xff] %v4510_v58  ;;  %v981_v51 = vld [vmem:[%s4834_s5 + $0x760] sm:$0xff]  ;;  %v992_v1 = vld [vmem:[%s4834_s5 + $0x7b8] sm:$0xff] }
 0x24f   :  { %v1000_v17 = vld [vmem:[%s4834_s5 + $0x7f8] sm:$0xff] }
 0x250   :  { %2553 = vmatpush1.bf16.msra.mxu1 %v4472_v6  ;;  %2617 = vmatpush1.bf16.msra.mxu0 %v4474_v4  ;;  %v4522_v6 = vpack.c.bf16 %v984_v9, %v976_v11  ;;  %v4544_v11 = vpack.c.bf16 %v981_v51, %v973_v52  ;;  %v4546_v9 = vpack.c.bf16 %v983_v32, %v975_v44  ;;  %v991_v51 = vld [vmem:[%s4834_s5 + $0x7b0] sm:$0xff] }
 0x251   :  { %2555 = vmatprep.subr.bf16.mxu1 %v4484_v7  ;;  %2619 = vmatprep.subr.bf16.mxu0 %v4486_v12  ;;  %v989_v12 = vld [vmem:[%s4834_s5 + $0x7a0] sm:$0xff]  ;;  %v4553_v7 = vpack.c.bf16 %v998_v49, %v990_v26  ;;  %v4555_v4 = vpack.c.bf16 %v1000_v17, %v992_v1  ;;  %v999_v52 = vld [vmem:[%s4834_s5 + $0x7f0] sm:$0xff] }
 0x252   :  { %v4570_v32 = vpack.c.bf16 %v999_v52, %v991_v51 }
 0x254   :  { %2557 = vmatpush1.bf16.msra.mxu1 %v4508_v59  ;;  %2621 = vmatpush1.bf16.msra.mxu0 %v4510_v58  ;;  %v997_v58 = vld [vmem:[%s4834_s5 + $0x7e0] sm:$0xff] }
 0x255   :  { %2559 = vmatprep.subr.bf16.mxu1 %v4520_v47  ;;  %2623 = vmatprep.subr.bf16.mxu0 %v4522_v6  ;;  %v4568_v44 = vpack.c.bf16 %v997_v58, %v989_v12  ;;  %v2937_v12 = vld [vmem:[%s4833_s3] sm:$0x1f] }
 0x258   :  { %2561 = vmatpush1.bf16.msra.mxu1 %v4544_v11  ;;  %2625 = vmatpush1.bf16.msra.mxu0 %v4546_v9 }
 0x259   :  { %2563 = vmatprep.subr.bf16.mxu1 %v4553_v7  ;;  %2627 = vmatprep.subr.bf16.mxu0 %v4555_v4 }
 0x25c   :  { %2565 = vmatpush1.bf16.msra.mxu1 %v4568_v44  ;;  %2629 = vmatpush1.bf16.msra.mxu0 %v4570_v32 }
 0x25d   :  { %2632 = vmatprep.subr.msk.bf16.mxu1 %vm3531_vm3, %v3981_v35  ;;  %2679 = vmatprep.subr.bf16.mxu0 %v3642_v55  ;;  %v5020_v55 = vld [vmem:[#allocation35_spill] sm:$0xff]  ;;  %v5056_v35 = vld [vmem:[#allocation38_spill] sm:$0xff] }
 0x25f   :  { %1386 = vmatmul.mubr.f32.vlgmr.msra.gmra.mrb[4].mxu1 %v4038_v43  ;;  %1457 = vmatmul.mubr.f32.vlgmr.msra.gmra.mrb[66].mxu0 %v4038_v43 }
 0x260   :  { %2210 = vmatprep.mubr.msk.f32.mxu1 %vm1003_vm2, %v2937_v12  ;;  %2681 = vmatpush1.bf16.msra.mxu0 %v3660_v61  ;;  %v5021_v61 = vld [vmem:[#allocation36_spill] sm:$0xff] }
 0x261   :  { %2683 = vmatprep.subr.bf16.mxu0 %v3662_v63  ;;  %v5022_v63 = vld [vmem:[#allocation39_spill] sm:$0xff] }
 0x264   :  { %2685 = vmatpush1.bf16.msra.mxu0 %v3679_v5  ;;  %v5023_v5 = vld [vmem:[#allocation37_spill] sm:$0xff] }
 0x265   :  { %2635 = vmatpush3.bf16.xpose.msk.msra.mxu1 %vm3531_vm3, %v3950_v27  ;;  %2687 = vmatprep.subr.bf16.mxu0 %v3682_v10  ;;  %v5019_v27 = vld [vmem:[#allocation34_spill] sm:$0xff] }
 0x266   :  { %2638 = vmatprep.subr.msk.bf16.mxu1 %vm3531_vm3, %v3985_v8  ;;  %v5018_v8 = vld [vmem:[#allocation40_spill] sm:$0xff]  ;;  %v5024_v10 = vld [vmem:[#allocation2_spill] sm:$0xff] }
 0x268   :  { %2689 = vmatpush1.bf16.msra.mxu0 %v3697_v25  ;;  %v5025_v25 = vld [vmem:[#allocation3_spill] sm:$0xff] }
 0x269   :  { %2691 = vmatprep.subr.bf16.mxu0 %v3700_v28  ;;  %v5026_v28 = vld [vmem:[#allocation4_spill] sm:$0xff] }
 0x26c   :  { %2693 = vmatpush1.bf16.msra.mxu0 %v3715_v41  ;;  %v5027_v41 = vld [vmem:[#allocation5_spill] sm:$0xff] }
 0x26d   :  { %2641 = vmatpush3.bf16.xpose.msk.msra.mxu1 %vm3531_vm3, %v3954_v53  ;;  %2695 = vmatprep.subr.bf16.mxu0 %v3718_v42  ;;  %v5028_v42 = vld [vmem:[#allocation6_spill] sm:$0xff]  ;;  %v5050_v53 = vld [vmem:[#allocation28_spill] sm:$0xff] }
 0x26e   :  { %2644 = vmatprep.subr.msk.bf16.mxu1 %vm3531_vm3, %v3989_v23  ;;  %v4697_v23 = vpop.permute.xlu0 %1176 }
 0x270   :  { %2697 = vmatpush1.bf16.msra.mxu0 %v3733_v50  ;;  %v5029_v50 = vld [vmem:[#allocation7_spill] sm:$0xff] }
 0x271   :  { %2699 = vmatprep.subr.bf16.mxu0 %v3736_v14  ;;  %v5030_v14 = vld [vmem:[#allocation8_spill] sm:$0xff] }
 0x274   :  { %2701 = vmatpush1.bf16.msra.mxu0 %v3751_v56  ;;  %v5032_v56 = vld [vmem:[#allocation10_spill] sm:$0xff] }
 0x275   :  { %2647 = vmatpush3.bf16.xpose.msk.msra.mxu1 %vm3531_vm3, %v3958_v46  ;;  %2703 = vmatprep.subr.bf16.mxu0 %v3754_v0  ;;  %v5033_v0 = vld [vmem:[#allocation11_spill] sm:$0xff]  ;;  %v5051_v46 = vld [vmem:[#allocation29_spill] sm:$0xff] }
 0x276   :  { %2650 = vmatprep.subr.msk.bf16.mxu1 %vm3531_vm3, %v3996_v48 }
 0x278   :  { %2705 = vmatpush1.bf16.msra.mxu0 %v3769_v20  ;;  %v5034_v20 = vld [vmem:[#allocation12_spill] sm:$0xff] }
 0x279   :  { %2707 = vmatprep.subr.bf16.mxu0 %v3772_v29  ;;  %v5035_v29 = vld [vmem:[#allocation13_spill] sm:$0xff] }
 0x27c   :  { %2709 = vmatpush1.bf16.msra.mxu0 %v3787_v13  ;;  %v5036_v13 = vld [vmem:[#allocation14_spill] sm:$0xff] }
 0x27d   :  { %2653 = vmatpush3.bf16.xpose.msk.msra.mxu1 %vm3531_vm3, %v3962_v24  ;;  %2711 = vmatprep.subr.bf16.mxu0 %v3790_v45  ;;  %v5037_v45 = vld [vmem:[#allocation15_spill] sm:$0xff]  ;;  %v5052_v24 = vld [vmem:[#allocation30_spill] sm:$0xff] }
 0x27e   :  { %2656 = vmatprep.subr.msk.bf16.mxu1 %vm3531_vm3, %v4000_v16 }
 0x280   :  { %2713 = vmatpush1.bf16.msra.mxu0 %v3805_v38  ;;  %v5038_v38 = vld [vmem:[#allocation16_spill] sm:$0xff] }
 0x281   :  { %2715 = vmatprep.subr.bf16.mxu0 %v3808_v3  ;;  %v5039_v3 = vld [vmem:[#allocation17_spill] sm:$0xff] }
 0x284   :  { %2717 = vmatpush1.bf16.msra.mxu0 %v3823_v34  ;;  %v5040_v34 = vld [vmem:[#allocation18_spill] sm:$0xff] }
 0x285   :  { %2659 = vmatpush3.bf16.xpose.msk.msra.mxu1 %vm3531_vm3, %v3966_v31  ;;  %2719 = vmatprep.subr.bf16.mxu0 %v3826_v37  ;;  %v5041_v37 = vld [vmem:[#allocation19_spill] sm:$0xff] }
 0x286   :  { %2662 = vmatprep.subr.msk.bf16.mxu1 %vm3531_vm3, %v4004_v18  ;;  %v5053_v31 = vld [vmem:[#allocation31_spill] sm:$0xff] }
 0x288   :  { %2721 = vmatpush1.bf16.msra.mxu0 %v3841_v60  ;;  %v5042_v60 = vld [vmem:[#allocation20_spill] sm:$0xff] }
 0x289   :  { %2723 = vmatprep.subr.bf16.mxu0 %v3844_v15  ;;  %v5043_v15 = vld [vmem:[#allocation21_spill] sm:$0xff] }
 0x28c   :  { %2725 = vmatpush1.bf16.msra.mxu0 %v3859_v30  ;;  %v5044_v30 = vld [vmem:[#allocation22_spill] sm:$0xff] }
 0x28d   :  { %2665 = vmatpush3.bf16.xpose.msk.msra.mxu1 %vm3531_vm3, %v3970_v2  ;;  %2727 = vmatprep.subr.bf16.mxu0 %v3862_v36  ;;  %v5045_v36 = vld [vmem:[#allocation23_spill] sm:$0xff]  ;;  %v5054_v2 = vld [vmem:[#allocation32_spill] sm:$0xff] }
 0x28e   :  { %2668 = vmatprep.subr.msk.bf16.mxu1 %vm3531_vm3, %v4010_v21 }
 0x290   :  { %2729 = vmatpush1.bf16.msra.mxu0 %v3877_v39  ;;  %v5046_v39 = vld [vmem:[#allocation24_spill] sm:$0xff] }
 0x291   :  { %2731 = vmatprep.subr.bf16.mxu0 %v3880_v33  ;;  %v5047_v33 = vld [vmem:[#allocation25_spill] sm:$0xff] }
 0x294   :  { %2733 = vmatpush1.bf16.msra.mxu0 %v3895_v19  ;;  %v5048_v19 = vld [vmem:[#allocation26_spill] sm:$0xff] }
 0x295   :  { %2671 = vmatpush3.bf16.xpose.msk.msra.mxu1 %vm3531_vm3, %v3974_v40  ;;  %2735 = vmatprep.subr.bf16.mxu0 %v3898_v57  ;;  %v5049_v57 = vld [vmem:[#allocation27_spill] sm:$0xff]  ;;  %v5055_v40 = vld [vmem:[#allocation33_spill] sm:$0xff] }
 0x296   :  { %2674 = vmatprep.subr.msk.bf16.mxu1 %vm3531_vm3, %v5018_v8 }
 0x298   :  { %2737 = vmatpush1.bf16.msra.mxu0 %v5019_v27 }
 0x299   :  { %2739 = vmatprep.subr.bf16.mxu0 %v5020_v55 }
 0x29c   :  { %2741 = vmatpush1.bf16.msra.mxu0 %v5021_v61 }
 0x29d   :  { %2677 = vmatpush3.bf16.xpose.msk.msra.mxu1 %vm3531_vm3, %v5022_v63  ;;  %2807 = vmatprep.subr.bf16.mxu0 %v5023_v5  ;;  %v5057_v5 = vld [vmem:[#allocation41_spill] sm:$0xff] }
 0x29e   :  { %2743 = vmatprep.subr.bf16.mxu1 %v5024_v10  ;;  %v5058_v10 = vld [vmem:[#allocation42_spill] sm:$0xff] }
 0x2a4   :  { %2211 = vmatmul.mubr.msk.f32.vlgmr.msra.gmra.mrb[6].mxu1 %vm1003_vm2, %v2937_v12 }
 0x2a5   :  { %2745 = vmatpush1.bf16.msra.mxu1 %v5025_v25  ;;  %v5059_v25 = vld [vmem:[#allocation43_spill] sm:$0xff] }
 0x2a6   :  { %2747 = vmatprep.subr.bf16.mxu1 %v5026_v28  ;;  %v5060_v28 = vld [vmem:[#allocation44_spill] sm:$0xff] }
 0x2a9   :  { %2749 = vmatpush1.bf16.msra.mxu1 %v5027_v41  ;;  %v5061_v41 = vld [vmem:[#allocation45_spill] sm:$0xff] }
 0x2aa   :  { %2751 = vmatprep.subr.bf16.mxu1 %v5028_v42  ;;  %v5062_v42 = vld [vmem:[#allocation46_spill] sm:$0xff] }
 0x2ad   :  { %2753 = vmatpush1.bf16.msra.mxu1 %v5029_v50  ;;  %v5063_v50 = vld [vmem:[#allocation47_spill] sm:$0xff] }
 0x2ae   :  { %2755 = vmatprep.subr.bf16.mxu1 %v5030_v14  ;;  %v5064_v14 = vld [vmem:[#allocation48_spill] sm:$0xff] }
 0x2b1   :  { %2757 = vmatpush1.bf16.msra.mxu1 %v5031_v22  ;;  %v5067_v22 = vld [vmem:[#allocation51_spill] sm:$0xff] }
 0x2b2   :  { %2759 = vmatprep.subr.bf16.mxu1 %v5032_v56  ;;  %v5068_v56 = vld [vmem:[#allocation52_spill] sm:$0xff] }
 0x2b5   :  { %2761 = vmatpush1.bf16.msra.mxu1 %v5033_v0  ;;  %v5069_v0 = vld [vmem:[#allocation53_spill] sm:$0xff] }
 0x2b6   :  { %2763 = vmatprep.subr.bf16.mxu1 %v5034_v20  ;;  %v5070_v20 = vld [vmem:[#allocation54_spill] sm:$0xff] }
 0x2b9   :  { %2765 = vmatpush1.bf16.msra.mxu1 %v5035_v29  ;;  %v5071_v29 = vld [vmem:[#allocation55_spill] sm:$0xff] }
 0x2ba   :  { %2767 = vmatprep.subr.bf16.mxu1 %v5036_v13  ;;  %v5072_v13 = vld [vmem:[#allocation56_spill] sm:$0xff] }
 0x2bd   :  { %2769 = vmatpush1.bf16.msra.mxu1 %v5037_v45  ;;  %v5073_v45 = vld [vmem:[#allocation57_spill] sm:$0xff] }
 0x2be   :  { %2771 = vmatprep.subr.bf16.mxu1 %v5038_v38  ;;  %v5074_v38 = vld [vmem:[#allocation58_spill] sm:$0xff] }
 0x2c1   :  { %2773 = vmatpush1.bf16.msra.mxu1 %v5039_v3  ;;  %v5075_v3 = vld [vmem:[#allocation59_spill] sm:$0xff] }
 0x2c2   :  { %2775 = vmatprep.subr.bf16.mxu1 %v5040_v34  ;;  %v5076_v34 = vld [vmem:[#allocation60_spill] sm:$0xff] }
 0x2c5   :  { %2777 = vmatpush1.bf16.msra.mxu1 %v5041_v37  ;;  %v5077_v37 = vld [vmem:[#allocation61_spill] sm:$0xff] }
 0x2c6   :  { %2779 = vmatprep.subr.bf16.mxu1 %v5042_v60  ;;  %v5078_v60 = vld [vmem:[#allocation62_spill] sm:$0xff] }
 0x2c9   :  { %2781 = vmatpush1.bf16.msra.mxu1 %v5043_v15  ;;  %v5079_v15 = vld [vmem:[#allocation63_spill] sm:$0xff] }
 0x2ca   :  { %2783 = vmatprep.subr.bf16.mxu1 %v5044_v30  ;;  %v5080_v30 = vld [vmem:[#allocation64_spill] sm:$0xff] }
 0x2cd   :  { %2785 = vmatpush1.bf16.msra.mxu1 %v5045_v36  ;;  %v5081_v36 = vld [vmem:[#allocation65_spill] sm:$0xff] }
 0x2ce   :  { %2787 = vmatprep.subr.bf16.mxu1 %v5046_v39  ;;  %v5082_v39 = vld [vmem:[#allocation66_spill] sm:$0xff] }
 0x2d1   :  { %2789 = vmatpush1.bf16.msra.mxu1 %v5047_v33  ;;  %v5083_v33 = vld [vmem:[#allocation67_spill] sm:$0xff] }
 0x2d2   :  { %2791 = vmatprep.subr.bf16.mxu1 %v5048_v19  ;;  %v5084_v19 = vld [vmem:[#allocation68_spill] sm:$0xff] }
 0x2d5   :  { %2793 = vmatpush1.bf16.msra.mxu1 %v5049_v57  ;;  %v5085_v57 = vld [vmem:[#allocation69_spill] sm:$0xff] }
 0x2d6   :  { %2795 = vmatprep.subr.bf16.mxu1 %v5050_v53  ;;  %v5086_v53 = vld [vmem:[#allocation70_spill] sm:$0xff] }
 0x2d9   :  { %2797 = vmatpush1.bf16.msra.mxu1 %v5051_v46  ;;  %v5087_v46 = vld [vmem:[#allocation71_spill] sm:$0xff] }
 0x2da   :  { %2799 = vmatprep.subr.bf16.mxu1 %v5052_v24  ;;  %v5088_v24 = vld [vmem:[#allocation72_spill] sm:$0xff] }
 0x2dd   :  { %2801 = vmatpush1.bf16.msra.mxu1 %v5053_v31  ;;  %v5089_v31 = vld [vmem:[#allocation73_spill] sm:$0xff] }
 0x2de   :  { %2803 = vmatprep.subr.bf16.mxu1 %v5054_v2  ;;  %v5090_v2 = vld [vmem:[#allocation74_spill] sm:$0xff] }
 0x2e1   :  { %2805 = vmatpush1.bf16.msra.mxu1 %v5055_v40  ;;  %v5091_v40 = vld [vmem:[#allocation75_spill] sm:$0xff] }
 0x2e2   :  { %2871 = vmatprep.subr.bf16.mxu1 %v5056_v35  ;;  %v5092_v35 = vld [vmem:[#allocation76_spill] sm:$0xff] }
 0x2f2   :  { %v1245_v48 = vpop.f32.mrb[2].mxu1  ;;  %v1316_v16 = vpop.f32.mrb[64].mxu0 }
 0x2f3   :  { %v1246_v18 = vadd.f32 %v1245_v48, %v4697_v23  ;;  %v1317_v21 = vadd.f32 %v1316_v16, %v4697_v23  ;;  %v1247_v43 = vpop.f32.mrb[3].mxu1  ;;  %v1318_v58 = vpop.f32.mrb[65].mxu0  ;;  %v5093_v48 = vld [vmem:[#allocation77_spill] sm:$0xff]  ;;  %v5094_v16 = vld [vmem:[#allocation78_spill] sm:$0xff] }
 0x2f4   :  { %v1248_v26 = vadd.f32 %v1247_v43, %v4697_v23  ;;  %v1319_v49 = vadd.f32 %v1318_v58, %v4697_v23  ;;  %v5097_v43 = vld [vmem:[#allocation81_spill] sm:$0xff]  ;;  %v5098_v58 = vld [vmem:[#allocation82_spill] sm:$0xff] }
 0x2f5   :  { %1463 = vst [vmem:[%s4837_s6] sm:$0x1f] %v1246_v18  ;;  %1465 = vst [vmem:[%s4837_s6 + $0x10] sm:$0x1f] %v1317_v21  ;;  %v5095_v18 = vld [vmem:[#allocation79_spill] sm:$0xff]  ;;  %v5096_v21 = vld [vmem:[#allocation80_spill] sm:$0xff] }
 0x2f6   :  { %1464 = vst [vmem:[%s4837_s6 + $0x8] sm:$0x1f] %v1248_v26  ;;  %1466 = vst [vmem:[%s4837_s6 + $0x18] sm:$0x1f] %v1319_v49  ;;  %v5099_v26 = vld [vmem:[#allocation83_spill] sm:$0xff]  ;;  %v5100_v49 = vld [vmem:[#allocation84_spill] sm:$0xff] }
 0x332   :  { %v1387_v1 = vpop.f32.mrb[4].mxu1  ;;  %v1458_v17 = vpop.f32.mrb[66].mxu0 }
 0x333   :  { %v1388_v51 = vadd.f32 %v1387_v1, %v4697_v23  ;;  %v1459_v52 = vadd.f32 %v1458_v17, %v4697_v23  ;;  %v1389_v12 = vpop.f32.mrb[5].mxu1  ;;  %v1460_v8 = vpop.f32.mrb[67].mxu0  ;;  %v5101_v1 = vld [vmem:[#allocation85_spill] sm:$0xff]  ;;  %v5102_v17 = vld [vmem:[#allocation86_spill] sm:$0xff] }
 0x334   :  { %v1390_v27 = vadd.f32 %v1389_v12, %v4697_v23  ;;  %v1461_v55 = vadd.f32 %v1460_v8, %v4697_v23  ;;  %v5105_v12 = vld [vmem:[#allocation89_spill] sm:$0xff]  ;;  %v5106_v8 = vld [vmem:[#allocation90_spill] sm:$0xff] }
 0x335   :  { %1467 = vst [vmem:[%s4837_s6 + $0x20] sm:$0x1f] %v1388_v51  ;;  %1469 = vst [vmem:[%s4837_s6 + $0x30] sm:$0x1f] %v1459_v52  ;;  %v5103_v51 = vld [vmem:[#allocation87_spill] sm:$0xff]  ;;  %v5104_v52 = vld [vmem:[#allocation88_spill] sm:$0xff] }
 0x336   :  { %1468 = vst [vmem:[%s4837_s6 + $0x28] sm:$0x1f] %v1390_v27  ;;  %1470 = vst [vmem:[%s4837_s6 + $0x38] sm:$0x1f] %v1461_v55  ;;  %v5107_v27 = vld [vmem:[#allocation91_spill] sm:$0xff] }
 0x377   :  { %v4731_v61 = vpop.f32.mrb[6].mxu1 }
 0x378   :  { %v1635_v63 = vpop.f32.mrb[7].mxu1 }
 0x379   :  { %1702 = vmatprep.mubr.f32.mxu0 %v1635_v63  ;;  %1773 = vmatprep.mubr.f32.mxu1 %v1635_v63 }
 0x37a   :  { %1703 = vmatmul.mubr.f32.vlgmr.msra.gmra.mrb[68].mxu0 %v4731_v61  ;;  %1774 = vmatmul.mubr.f32.vlgmr.msra.gmra.mrb[8].mxu1 %v4731_v61 }
 0x37b   :  { %2809 = vmatpush1.bf16.msra.mxu0 %v4040_v62  ;;  %2873 = vmatpush1.bf16.msra.mxu1 %v4042_v54  ;;  %v5065_v62 = vld [vmem:[#allocation49_spill] sm:$0xff]  ;;  %v5066_v54 = vld [vmem:[#allocation50_spill] sm:$0xff] }
 0x37c   :  { %1844 = vmatprep.mubr.f32.mxu0 %v1635_v63  ;;  %1915 = vmatprep.mubr.f32.mxu1 %v1635_v63 }
 0x37d   :  { %2811 = vmatprep.subr.bf16.mxu0 %v5057_v5  ;;  %2875 = vmatprep.subr.bf16.mxu1 %v5058_v10 }
 0x37f   :  { %2813 = vmatpush1.bf16.msra.mxu0 %v5059_v25  ;;  %2877 = vmatpush1.bf16.msra.mxu1 %v5060_v28 }
 0x380   :  { %2815 = vmatprep.subr.bf16.mxu0 %v5061_v41  ;;  %2879 = vmatprep.subr.bf16.mxu1 %v5062_v42 }
 0x383   :  { %2817 = vmatpush1.bf16.msra.mxu0 %v5063_v50  ;;  %2881 = vmatpush1.bf16.msra.mxu1 %v5064_v14 }
 0x384   :  { %2819 = vmatprep.subr.bf16.mxu0 %v5065_v62  ;;  %2883 = vmatprep.subr.bf16.mxu1 %v5066_v54 }
 0x387   :  { %2821 = vmatpush1.bf16.msra.mxu0 %v5067_v22  ;;  %2885 = vmatpush1.bf16.msra.mxu1 %v5068_v56 }
 0x388   :  { %2823 = vmatprep.subr.bf16.mxu0 %v5069_v0  ;;  %2887 = vmatprep.subr.bf16.mxu1 %v5070_v20 }
 0x38b   :  { %2825 = vmatpush1.bf16.msra.mxu0 %v5071_v29  ;;  %2889 = vmatpush1.bf16.msra.mxu1 %v5072_v13 }
 0x38c   :  { %2827 = vmatprep.subr.bf16.mxu0 %v5073_v45  ;;  %2891 = vmatprep.subr.bf16.mxu1 %v5074_v38 }
 0x38f   :  { %2829 = vmatpush1.bf16.msra.mxu0 %v5075_v3  ;;  %2893 = vmatpush1.bf16.msra.mxu1 %v5076_v34 }
 0x390   :  { %2831 = vmatprep.subr.bf16.mxu0 %v5077_v37  ;;  %2895 = vmatprep.subr.bf16.mxu1 %v5078_v60 }
 0x393   :  { %2833 = vmatpush1.bf16.msra.mxu0 %v5079_v15  ;;  %2897 = vmatpush1.bf16.msra.mxu1 %v5080_v30 }
 0x394   :  { %2835 = vmatprep.subr.bf16.mxu0 %v5081_v36  ;;  %2899 = vmatprep.subr.bf16.mxu1 %v5082_v39 }
 0x397   :  { %2837 = vmatpush1.bf16.msra.mxu0 %v5083_v33  ;;  %2901 = vmatpush1.bf16.msra.mxu1 %v5084_v19 }
 0x398   :  { %2839 = vmatprep.subr.bf16.mxu0 %v5085_v57  ;;  %2903 = vmatprep.subr.bf16.mxu1 %v5086_v53 }
 0x39b   :  { %2841 = vmatpush1.bf16.msra.mxu0 %v5087_v46  ;;  %2905 = vmatpush1.bf16.msra.mxu1 %v5088_v24 }
 0x39c   :  { %2843 = vmatprep.subr.bf16.mxu0 %v5089_v31  ;;  %2907 = vmatprep.subr.bf16.mxu1 %v5090_v2 }
 0x39f   :  { %2845 = vmatpush1.bf16.msra.mxu0 %v5091_v40  ;;  %2909 = vmatpush1.bf16.msra.mxu1 %v5092_v35 }
 0x3a0   :  { %2847 = vmatprep.subr.bf16.mxu0 %v5093_v48  ;;  %2911 = vmatprep.subr.bf16.mxu1 %v5094_v16 }
 0x3a3   :  { %2849 = vmatpush1.bf16.msra.mxu0 %v5095_v18  ;;  %2913 = vmatpush1.bf16.msra.mxu1 %v5096_v21 }
 0x3a4   :  { %2851 = vmatprep.subr.bf16.mxu0 %v5097_v43  ;;  %2915 = vmatprep.subr.bf16.mxu1 %v5098_v58 }
 0x3a7   :  { %2853 = vmatpush1.bf16.msra.mxu0 %v5099_v26  ;;  %2917 = vmatpush1.bf16.msra.mxu1 %v5100_v49 }
 0x3a8   :  { %2855 = vmatprep.subr.bf16.mxu0 %v5101_v1  ;;  %2919 = vmatprep.subr.bf16.mxu1 %v5102_v17 }
 0x3ab   :  { %2857 = vmatpush1.bf16.msra.mxu0 %v5103_v51  ;;  %2921 = vmatpush1.bf16.msra.mxu1 %v5104_v52 }
 0x3ac   :  { %2859 = vmatprep.subr.bf16.mxu0 %v5105_v12  ;;  %2923 = vmatprep.subr.bf16.mxu1 %v5106_v8 }
 0x3af   :  { %2861 = vmatpush1.bf16.msra.mxu0 %v4508_v59  ;;  %2925 = vmatpush1.bf16.msra.mxu1 %v5107_v27 }
 0x3b0   :  { %2863 = vmatprep.subr.bf16.mxu0 %v4520_v47  ;;  %2927 = vmatprep.subr.bf16.mxu1 %v4522_v6 }
 0x3b3   :  { %2865 = vmatpush1.bf16.msra.mxu0 %v4544_v11  ;;  %2929 = vmatpush1.bf16.msra.mxu1 %v4546_v9 }
 0x3b4   :  { %2867 = vmatprep.subr.bf16.mxu0 %v4553_v7  ;;  %2931 = vmatprep.subr.bf16.mxu1 %v4555_v4 }
 0x3b7   :  { %2869 = vmatpush1.bf16.msra.mxu0 %v4568_v44  ;;  %2933 = vmatpush1.bf16.msra.mxu1 %v4570_v32 }
 0x3ba   :  { %1845 = vmatmul.mubr.f32.vlgmr.msra.gmra.mrb[70].mxu0 %v4731_v61  ;;  %1916 = vmatmul.mubr.f32.vlgmr.msra.gmra.mrb[10].mxu1 %v4731_v61 }
 0x44d   :  { %v1704_v59 = vpop.f32.mrb[68].mxu0  ;;  %v1775_v47 = vpop.f32.mrb[8].mxu1 }
 0x44e   :  { %v1705_v6 = vadd.f32 %v1704_v59, %v4697_v23  ;;  %v1776_v11 = vadd.f32 %v1775_v47, %v4697_v23  ;;  %v1706_v55 = vpop.f32.mrb[69].mxu0  ;;  %v1777_v9 = vpop.f32.mrb[9].mxu1 }
 0x44f   :  { %v1707_v7 = vadd.f32 %v1706_v55, %v4697_v23  ;;  %v1778_v4 = vadd.f32 %v1777_v9, %v4697_v23 }
 0x450   :  { %2067 = vst [vmem:[%s4837_s6 + $0x40] sm:$0x1f] %v1705_v6  ;;  %2069 = vst [vmem:[%s4837_s6 + $0x50] sm:$0x1f] %v1776_v11 }
 0x451   :  { %2068 = vst [vmem:[%s4837_s6 + $0x48] sm:$0x1f] %v1707_v7  ;;  %2070 = vst [vmem:[%s4837_s6 + $0x58] sm:$0x1f] %v1778_v4 }
 0x48d   :  { %v1846_v44 = vpop.f32.mrb[70].mxu0  ;;  %v1917_v32 = vpop.f32.mrb[10].mxu1 }
 0x48e   :  { %v1847_v61 = vadd.f32 %v1846_v44, %v4697_v23  ;;  %v1918_v63 = vadd.f32 %v1917_v32, %v4697_v23  ;;  %v1848_v5 = vpop.f32.mrb[71].mxu0  ;;  %v1919_v10 = vpop.f32.mrb[11].mxu1 }
 0x48f   :  { %v1849_v25 = vadd.f32 %v1848_v5, %v4697_v23  ;;  %v1920_v28 = vadd.f32 %v1919_v10, %v4697_v23 }
 0x490   :  { %2071 = vst [vmem:[%s4837_s6 + $0x60] sm:$0x1f] %v1847_v61  ;;  %2073 = vst [vmem:[%s4837_s6 + $0x70] sm:$0x1f] %v1918_v63 }
 0x491   :  { %2072 = vst [vmem:[%s4837_s6 + $0x68] sm:$0x1f] %v1849_v25  ;;  %2074 = vst [vmem:[%s4837_s6 + $0x78] sm:$0x1f] %v1920_v28 }

</bundles_post_ra>
